<compile_context>
chip_gen: v7x
topology: tpu7x:2x2x1
jax: 0.10.0
libtpu: 0.0.40
codegen_flags: <defaults>
</compile_context>

<pallas_src>
import math

import numpy as np
import jax
import jax.numpy as jnp
from jax.experimental import pallas as pl
from jax.experimental.pallas import tpu as pltpu

# ----- model config (small, consistent with the module's __init__) -----
HIDDEN = 32                       # config.hidden_size
NUM_HEADS = 4                     # config.transformer['num_heads']
HEAD_DIM = HIDDEN // NUM_HEADS
MLP_DIM = 64                      # config.transformer['mlp_dim']
SEQ = 8
BATCH = 2
EPS = 1e-6

TOK = BATCH * SEQ                 # 16 tokens
CCOL = BATCH * NUM_HEADS * SEQ    # 64 expanded score columns (batch, head, key-pos)
LANES = 64                        # parameter-slab lane width (max needed: MLP_DIM)


# ---------------- parameter-slab layout (rows; all weight starts are multiples of 8) ----
def _build_layout():
    rows = {}
    r = 0

    def add(name, nrows):
        nonlocal r
        rows[name] = r
        r += nrows

    for a in ('a1', 'a2'):
        for w in ('wq', 'wk', 'wv', 'wo'):
            add(f'{a}_{w}', HIDDEN)
    add('fg_a', HIDDEN)
    add('fg_h', HIDDEN)
    add('w1', HIDDEN)            # (H, MLP)
    add('w2', MLP_DIM)           # (MLP, H)
    add('et', CCOL)              # (CCOL, TOK)   0/1 token -> score-column expansion
    add('mask', CCOL)            # (CCOL, H)     0/1 head mask (also the denom matmul RHS)
    add('neg', TOK)              # (TOK, CCOL)   0 where same batch, 1e30 otherwise
    for name in ('a1_bq', 'a1_bk', 'a1_bv', 'a1_bo',
                 'a2_bq', 'a2_bk', 'a2_bv', 'a2_bo',
                 'b_fg', 'b1', 'b2',
                 'ln1_g', 'ln1_b', 'lnmg_g', 'lnmg_b', 'lnffn_g', 'lnffn_b'):
        add(name, 1)
    total = ((r + 7) // 8) * 8
    return rows, total


LAYOUT, PARAM_ROWS = _build_layout()   # PARAM_ROWS == 584


# ---------------- in-kernel helper ----------------
def _gelu(x):
    # exact (erf) GELU, matching torch.nn.functional.gelu default
    return 0.5 * x * (1.0 + jax.lax.erf(x * (1.0 / math.sqrt(2.0))))


# ---------------- the Pallas kernel: whole layer in one grid step ----------------
def encoder_layer_kernel(x_ref, y_ref, p_ref, o_ref):
    H = HIDDEN

    def W(name, nrows=HIDDEN, ncols=HIDDEN):
        r = LAYOUT[name]
        return p_ref[r:r + nrows, 0:ncols]          # tile-aligned weight view (load)

    def vec(name, n=HIDDEN):
        r = LAYOUT[name]
        return p_ref[r:r + 1, 0:n]                  # (1, n) sublane-broadcast bias/LN row

    # constant slabs (loaded once, shared by both attentions)
    et = p_ref[LAYOUT['et']:LAYOUT['et'] + CCOL, 0:TOK]       # (64, 16)
    hm = p_ref[LAYOUT['mask']:LAYOUT['mask'] + CCOL, 0:H]     # (64, 32)
    neg = p_ref[LAYOUT['neg']:LAYOUT['neg'] + TOK, 0:CCOL]    # (16, 64)

    def layernorm(v, gname, bname):
        mu = jnp.mean(v, axis=-1, keepdims=True)
        ms = jnp.mean(v * v, axis=-1, keepdims=True)
        var = ms - mu * mu                         # one-pass variance (two indep. reductions)
        return (v - mu) * jax.lax.rsqrt(var + EPS) * vec(gname) + vec(bname)

    def attention(q_in, kv_in, pfx):
        # projections; 1/sqrt(head_dim) is pre-folded into Wq / bq host-side
        q = jnp.dot(q_in, W(f'{pfx}_wq'), preferred_element_type=jnp.float32) + vec(f'{pfx}_bq')
        k = jnp.dot(kv_in, W(f'{pfx}_wk'), preferred_element_type=jnp.float32) + vec(f'{pfx}_bk')
        v = jnp.dot(kv_in, W(f'{pfx}_wv'), preferred_element_type=jnp.float32) + vec(f'{pfx}_bv')

        # expand keys/values into the (batch, head, key-pos) score-column layout with
        # matmuls against constant 0/1 slabs -- no head slices, reshapes or transposes.
        kexp = jnp.dot(et, k, preferred_element_type=jnp.float32) * hm     # (64, 32)
        vexp = jnp.dot(et, v, preferred_element_type=jnp.float32) * hm     # (64, 32)

        # scores: q @ kexp^T via an NT dot_general; mask wrong-batch columns to -1e30.
        s = jax.lax.dot_general(q, kexp, (((1,), (1,)), ((), ())),
                                preferred_element_type=jnp.float32)        # (16, 64)
        s = s - neg
        # NOTE: row max spans all heads (valid columns only); exact unless the per-head
        # score spread exceeds ~87 (exp underflow) -- impossible at this scale.
        p = jnp.exp(s - jnp.max(s, axis=-1, keepdims=True))                # (16, 64)

        ctx = jnp.dot(p, vexp, preferred_element_type=jnp.float32)         # (16, 32)
        den = jnp.dot(p, hm, preferred_element_type=jnp.float32)           # (16, 32)
        ctx = ctx * pl.reciprocal(den, approx=True)                        # divide on EUP
        return jnp.dot(ctx, W(f'{pfx}_wo'), preferred_element_type=jnp.float32) + vec(f'{pfx}_bo')

    x = x_ref[...]      # (B*S, H)
    y = y_ref[...]      # (B*S, H)

    # ---- block 1: self-attention ----
    h = x
    xn = layernorm(x, 'ln1_g', 'ln1_b')
    x = attention(xn, xn, 'a1') + h

    # ---- block 2: cross-attention (mg) + forget gate ----
    h = x
    xn = layernorm(x, 'lnmg_g', 'lnmg_b')
    yn = layernorm(y, 'lnmg_g', 'lnmg_b')    # shared attention_norm_mg params
    a = attention(xn, yn, 'a2')
    gate = jax.nn.sigmoid(
        jnp.dot(a, W('fg_a'), preferred_element_type=jnp.float32)
        + jnp.dot(h, W('fg_h'), preferred_element_type=jnp.float32)
        + vec('b_fg'))
    x = gate * a + h

    # ---- block 3: MLP ----
    h = x
    xn = layernorm(x, 'lnffn_g', 'lnffn_b')
    f1 = _gelu(jnp.dot(xn, W('w1', HIDDEN, MLP_DIM), preferred_element_type=jnp.float32)
               + vec('b1', MLP_DIM))
    f2 = (jnp.dot(f1, W('w2', MLP_DIM, HIDDEN), preferred_element_type=jnp.float32)
          + vec('b2'))
    x = f2 + h

    o_ref[...] = x


# ---------------- wrapper ----------------
def transformer_encoder_layer_fg(x, y, params):
    B, S, H = x.shape
    assert (B, S, H) == (BATCH, SEQ, HIDDEN)
    assert params.shape == (PARAM_ROWS, LANES)
    x2 = x.reshape(B * S, H)
    y2 = y.reshape(B * S, H)

    out = pl.pallas_call(
        encoder_layer_kernel,
        out_shape=jax.ShapeDtypeStruct((B * S, H), jnp.float32),
        grid_spec=pltpu.PrefetchScalarGridSpec(
            num_scalar_prefetch=0,
            grid=(1,),                       # whole layer in one step; fits VMEM trivially
            in_specs=[
                pl.BlockSpec((B * S, H), lambda i: (0, 0)),
                pl.BlockSpec((B * S, H), lambda i: (0, 0)),
                pl.BlockSpec((PARAM_ROWS, LANES), lambda i: (0, 0)),
            ],
            out_specs=pl.BlockSpec((B * S, H), lambda i: (0, 0)),
        ),
        compiler_params=pltpu.CompilerParams(dimension_semantics=("arbitrary",)),
    )(x2, y2, params)
    return out.reshape(B, S, H)


# ---------------- deterministic parameter construction (PyTorch layout) ----------------
def init_raw_params(key):
    keys = jax.random.split(key, 32)
    it = iter(keys)

    def w(shape, scale=0.05):
        return jax.random.normal(next(it), shape, jnp.float32) * scale

    def b(n, scale=0.02):
        return jax.random.normal(next(it), (n,), jnp.float32) * scale

    def attn():
        return dict(wq=w((HIDDEN, HIDDEN)), bq=b(HIDDEN),
                    wk=w((HIDDEN, HIDDEN)), bk=b(HIDDEN),
                    wv=w((HIDDEN, HIDDEN)), bv=b(HIDDEN),
                    wo=w((HIDDEN, HIDDEN)), bo=b(HIDDEN))

    return dict(
        ln1_g=jnp.ones((HIDDEN,), jnp.float32), ln1_b=jnp.zeros((HIDDEN,), jnp.float32),
        lnmg_g=jnp.ones((HIDDEN,), jnp.float32), lnmg_b=jnp.zeros((HIDDEN,), jnp.float32),
        lnffn_g=jnp.ones((HIDDEN,), jnp.float32), lnffn_b=jnp.zeros((HIDDEN,), jnp.float32),
        attn1=attn(), attn2=attn(),
        wfg=w((HIDDEN, 2 * HIDDEN)), bfg=b(HIDDEN),          # fg = Linear(2H, H)
        w1=w((MLP_DIM, HIDDEN)), b1=b(MLP_DIM, scale=1e-6),  # fc1
        w2=w((HIDDEN, MLP_DIM)), b2=b(HIDDEN, scale=1e-6),   # fc2
    )


def pack_params(raw):
    """Pre-transpose / scale / pack all weights, biases and attention constants into
    one (PARAM_ROWS, LANES) f32 slab (single DMA)."""
    P = np.zeros((PARAM_ROWS, LANES), np.float32)

    def put(name, arr):
        arr = np.asarray(arr, np.float32)
        if arr.ndim == 1:
            arr = arr[None, :]
        r = LAYOUT[name]
        P[r:r + arr.shape[0], :arr.shape[1]] = arr

    scale = 1.0 / math.sqrt(HEAD_DIM)
    for pfx, key in (('a1', 'attn1'), ('a2', 'attn2')):
        a = raw[key]
        put(f'{pfx}_wq', np.asarray(a['wq']).T * scale)
        put(f'{pfx}_wk', np.asarray(a['wk']).T)
        put(f'{pfx}_wv', np.asarray(a['wv']).T)
        put(f'{pfx}_wo', np.asarray(a['wo']).T)
        put(f'{pfx}_bq', np.asarray(a['bq']) * scale)
        put(f'{pfx}_bk', a['bk'])
        put(f'{pfx}_bv', a['bv'])
        put(f'{pfx}_bo', a['bo'])

    wfgT = np.asarray(raw['wfg']).T                 # (2H, H)
    put('fg_a', wfgT[:HIDDEN])                      # multiplies the attention output `a`
    put('fg_h', wfgT[HIDDEN:])                      # multiplies the residual `h`
    put('b_fg', raw['bfg'])
    put('w1', np.asarray(raw['w1']).T)              # (H, MLP)
    put('b1', raw['b1'])
    put('w2', np.asarray(raw['w2']).T)              # (MLP, H)
    put('b2', raw['b2'])
    put('ln1_g', raw['ln1_g']); put('ln1_b', raw['ln1_b'])
    put('lnmg_g', raw['lnmg_g']); put('lnmg_b', raw['lnmg_b'])
    put('lnffn_g', raw['lnffn_g']); put('lnffn_b', raw['lnffn_b'])

    # --- constant slabs for the head-relayout-free attention ---
    c = np.arange(CCOL)                             # score column = b'*NH*S + h*S + j
    bcol = c // (NUM_HEADS * SEQ)
    jcol = c % SEQ
    hcol = (c % (NUM_HEADS * SEQ)) // SEQ
    et = np.zeros((CCOL, TOK), np.float32)          # 0/1 expansion: column c picks token b'*S+j
    et[c, bcol * SEQ + jcol] = 1.0
    put('et', et)
    f = np.arange(HIDDEN)
    put('mask', (f[None, :] // HEAD_DIM == hcol[:, None]).astype(np.float32))   # (CCOL, H)
    t = np.arange(TOK)
    put('neg', np.where(bcol[None, :] == (t[:, None] // SEQ), 0.0, 1e30).astype(np.float32))
    return jnp.asarray(P)


# ---------------- pure-JAX reference (literal translation of the module) ----------------
def reference_forward(x, y, raw):
    B, S, H = x.shape
    P = jax.lax.Precision.HIGHEST

    def ln(t, g, b):
        mu = jnp.mean(t, axis=-1, keepdims=True)
        var = jnp.mean(jnp.square(t - mu), axis=-1, keepdims=True)
        return (t - mu) / jnp.sqrt(var + EPS) * g + b

    def lin(t, w, b):
        return jnp.einsum('...i,oi->...o', t, w, precision=P) + b

    def attention(tgt, mem, p):
        def heads(t):
            return t.reshape(B, S, NUM_HEADS, HEAD_DIM).transpose(0, 2, 1, 3)
        q = heads(lin(tgt, p['wq'], p['bq']))
        k = heads(lin(mem, p['wk'], p['bk']))
        v = heads(lin(mem, p['wv'], p['bv']))
        s = jnp.einsum('bhqd,bhkd->bhqk', q, k, precision=P) / math.sqrt(HEAD_DIM)
        a = jax.nn.softmax(s, axis=-1)
        ctx = jnp.einsum('bhqk,bhkd->bhqd', a, v, precision=P)
        ctx = ctx.transpose(0, 2, 1, 3).reshape(B, S, H)
        return lin(ctx, p['wo'], p['bo'])

    h = x
    xx = attention(ln(x, raw['ln1_g'], raw['ln1_b']),
                   ln(x, raw['ln1_g'], raw['ln1_b']), raw['attn1']) + h

    h = xx
    xn = ln(xx, raw['lnmg_g'], raw['lnmg_b'])
    yn = ln(y, raw['lnmg_g'], raw['lnmg_b'])
    a = attention(xn, yn, raw['attn2'])
    gate = jax.nn.sigmoid(lin(jnp.concatenate([a, h], axis=-1), raw['wfg'], raw['bfg']))
    xx = gate * a + h

    h = xx
    xn = ln(xx, raw['lnffn_g'], raw['lnffn_b'])
    f1 = _gelu(lin(xn, raw['w1'], raw['b1']))
    f2 = lin(f1, raw['w2'], raw['b2'])
    return f2 + h


if __name__ == "__main__":
    key = jax.random.PRNGKey(0)
    kx, ky, kp = jax.random.split(key, 3)
    x = jax.random.normal(kx, (BATCH, SEQ, HIDDEN), jnp.float32)
    y = jax.random.normal(ky, (BATCH, SEQ, HIDDEN), jnp.float32)
    raw = init_raw_params(kp)
    params = pack_params(raw)

    out = transformer_encoder_layer_fg(x, y, params)
    out = jax.block_until_ready(out)
    assert out.shape == (BATCH, SEQ, HIDDEN)
    assert bool(jnp.all(jnp.isfinite(out)))

    ref = reference_forward(x, y, raw)
    err = float(jnp.max(jnp.abs(out - ref)))
    assert err < 2e-3, f"max abs error vs reference = {err}"
    print("KERNEL_OK")
</pallas_src>

<mosaic_0001>
module attributes {stable_mosaic.version = 11 : i64} {
  func.func @encoder_layer_kernel(%arg0: i32, %arg1: memref<16x32xf32, #tpu.memory_space<vmem>>, %arg2: memref<16x32xf32, #tpu.memory_space<vmem>>, %arg3: memref<584x64xf32, #tpu.memory_space<vmem>>, %arg4: memref<16x32xf32, #tpu.memory_space<vmem>>) attributes {dimension_semantics = [#tpu.dimension_semantics<arbitrary>], iteration_bounds = array<i64: 1>, scalar_prefetch = 0 : i64, scratch_operands = 0 : i64, tpu.core_type = #tpu.core_type<tc>, window_params = [{pipeline_mode = #tpu.pipeline_mode<synchronous>, transform_indices = @transform_0, window_bounds = array<i64: 16, 32>}, {pipeline_mode = #tpu.pipeline_mode<synchronous>, transform_indices = @transform_1, window_bounds = array<i64: 16, 32>}, {pipeline_mode = #tpu.pipeline_mode<synchronous>, transform_indices = @transform_2, window_bounds = array<i64: 584, 64>}, {pipeline_mode = #tpu.pipeline_mode<synchronous>, transform_indices = @transform_3, window_bounds = array<i64: 16, 32>}]} {
    %c416 = arith.constant 416 : index
    %c0 = arith.constant 0 : index
    %0 = vector.load %arg3[%c416, %c0] : memref<584x64xf32, #tpu.memory_space<vmem>>, vector<64x16xf32>
    %c480 = arith.constant 480 : index
    %c0_0 = arith.constant 0 : index
    %1 = vector.load %arg3[%c480, %c0_0] : memref<584x64xf32, #tpu.memory_space<vmem>>, vector<64x32xf32>
    %c544 = arith.constant 544 : index
    %c0_1 = arith.constant 0 : index
    %2 = vector.load %arg3[%c544, %c0_1] : memref<584x64xf32, #tpu.memory_space<vmem>>, vector<16x64xf32>
    %c0_2 = arith.constant 0 : index
    %c0_3 = arith.constant 0 : index
    %3 = vector.load %arg1[%c0_2, %c0_3] : memref<16x32xf32, #tpu.memory_space<vmem>>, vector<16x32xf32>
    %c0_4 = arith.constant 0 : index
    %c0_5 = arith.constant 0 : index
    %4 = vector.load %arg2[%c0_4, %c0_5] : memref<16x32xf32, #tpu.memory_space<vmem>>, vector<16x32xf32>
    %cst = arith.constant dense<0.000000e+00> : vector<16xf32>
    %5 = vector.multi_reduction <add>, %3, %cst [1] : vector<16x32xf32> to vector<16xf32>
    %6 = vector.shape_cast %5 : vector<16xf32> to vector<16x1xf32>
    %cst_6 = arith.constant 3.200000e+01 : f32
    %7 = vector.broadcast %cst_6 : f32 to vector<16x1xf32>
    %8 = arith.divf %6, %7 : vector<16x1xf32>
    %9 = arith.mulf %3, %3 : vector<16x32xf32>
    %cst_7 = arith.constant dense<0.000000e+00> : vector<16xf32>
    %10 = vector.multi_reduction <add>, %9, %cst_7 [1] : vector<16x32xf32> to vector<16xf32>
    %11 = vector.shape_cast %10 : vector<16xf32> to vector<16x1xf32>
    %cst_8 = arith.constant 3.200000e+01 : f32
    %12 = vector.broadcast %cst_8 : f32 to vector<16x1xf32>
    %13 = arith.divf %11, %12 : vector<16x1xf32>
    %14 = arith.mulf %8, %8 : vector<16x1xf32>
    %15 = arith.subf %13, %14 : vector<16x1xf32>
    %16 = vector.broadcast %8 : vector<16x1xf32> to vector<16x32xf32>
    %17 = arith.subf %3, %16 : vector<16x32xf32>
    %cst_9 = arith.constant 9.99999997E-7 : f32
    %18 = vector.broadcast %cst_9 : f32 to vector<16x1xf32>
    %19 = arith.addf %15, %18 : vector<16x1xf32>
    %20 = math.rsqrt %19 : vector<16x1xf32>
    %21 = vector.broadcast %20 : vector<16x1xf32> to vector<16x32xf32>
    %22 = arith.mulf %17, %21 : vector<16x32xf32>
    %c571 = arith.constant 571 : index
    %c0_10 = arith.constant 0 : index
    %23 = vector.load %arg3[%c571, %c0_10] : memref<584x64xf32, #tpu.memory_space<vmem>>, vector<1x32xf32>
    %24 = vector.broadcast %23 : vector<1x32xf32> to vector<16x32xf32>
    %25 = arith.mulf %22, %24 : vector<16x32xf32>
    %c572 = arith.constant 572 : index
    %c0_11 = arith.constant 0 : index
    %26 = vector.load %arg3[%c572, %c0_11] : memref<584x64xf32, #tpu.memory_space<vmem>>, vector<1x32xf32>
    %27 = vector.broadcast %26 : vector<1x32xf32> to vector<16x32xf32>
    %28 = arith.addf %25, %27 : vector<16x32xf32>
    %c0_12 = arith.constant 0 : index
    %c0_13 = arith.constant 0 : index
    %29 = vector.load %arg3[%c0_12, %c0_13] : memref<584x64xf32, #tpu.memory_space<vmem>>, vector<32x32xf32>
    %cst_14 = arith.constant dense<0.000000e+00> : vector<16x32xf32>
    %30 = tpu.matmul %28, %29, %cst_14 {dimension_numbers = #tpu.dot_dimension_numbers<[1], [0], [0], [1], [0, 0, 1, 1], [], []>} : vector<16x32xf32>, vector<32x32xf32>, vector<16x32xf32> -> vector<16x32xf32>
    %c560 = arith.constant 560 : index
    %c0_15 = arith.constant 0 : index
    %31 = vector.load %arg3[%c560, %c0_15] : memref<584x64xf32, #tpu.memory_space<vmem>>, vector<1x32xf32>
    %32 = vector.broadcast %31 : vector<1x32xf32> to vector<16x32xf32>
    %33 = arith.addf %30, %32 : vector<16x32xf32>
    %c32 = arith.constant 32 : index
    %c0_16 = arith.constant 0 : index
    %34 = vector.load %arg3[%c32, %c0_16] : memref<584x64xf32, #tpu.memory_space<vmem>>, vector<32x32xf32>
    %cst_17 = arith.constant dense<0.000000e+00> : vector<16x32xf32>
    %35 = tpu.matmul %28, %34, %cst_17 {dimension_numbers = #tpu.dot_dimension_numbers<[1], [0], [0], [1], [0, 0, 1, 1], [], []>} : vector<16x32xf32>, vector<32x32xf32>, vector<16x32xf32> -> vector<16x32xf32>
    %c561 = arith.constant 561 : index
    %c0_18 = arith.constant 0 : index
    %36 = vector.load %arg3[%c561, %c0_18] : memref<584x64xf32, #tpu.memory_space<vmem>>, vector<1x32xf32>
    %37 = vector.broadcast %36 : vector<1x32xf32> to vector<16x32xf32>
    %38 = arith.addf %35, %37 : vector<16x32xf32>
    %c64 = arith.constant 64 : index
    %c0_19 = arith.constant 0 : index
    %39 = vector.load %arg3[%c64, %c0_19] : memref<584x64xf32, #tpu.memory_space<vmem>>, vector<32x32xf32>
    %cst_20 = arith.constant dense<0.000000e+00> : vector<16x32xf32>
    %40 = tpu.matmul %28, %39, %cst_20 {dimension_numbers = #tpu.dot_dimension_numbers<[1], [0], [0], [1], [0, 0, 1, 1], [], []>} : vector<16x32xf32>, vector<32x32xf32>, vector<16x32xf32> -> vector<16x32xf32>
    %c562 = arith.constant 562 : index
    %c0_21 = arith.constant 0 : index
    %41 = vector.load %arg3[%c562, %c0_21] : memref<584x64xf32, #tpu.memory_space<vmem>>, vector<1x32xf32>
    %42 = vector.broadcast %41 : vector<1x32xf32> to vector<16x32xf32>
    %43 = arith.addf %40, %42 : vector<16x32xf32>
    %cst_22 = arith.constant dense<0.000000e+00> : vector<64x32xf32>
    %44 = tpu.matmul %0, %38, %cst_22 {dimension_numbers = #tpu.dot_dimension_numbers<[1], [0], [0], [1], [0, 0, 1, 1], [], []>} : vector<64x16xf32>, vector<16x32xf32>, vector<64x32xf32> -> vector<64x32xf32>
    %45 = arith.mulf %44, %1 : vector<64x32xf32>
    %cst_23 = arith.constant dense<0.000000e+00> : vector<64x32xf32>
    %46 = tpu.matmul %0, %43, %cst_23 {dimension_numbers = #tpu.dot_dimension_numbers<[1], [0], [0], [1], [0, 0, 1, 1], [], []>} : vector<64x16xf32>, vector<16x32xf32>, vector<64x32xf32> -> vector<64x32xf32>
    %47 = arith.mulf %46, %1 : vector<64x32xf32>
    %cst_24 = arith.constant dense<0.000000e+00> : vector<16x64xf32>
    %48 = tpu.matmul %33, %45, %cst_24 {dimension_numbers = #tpu.dot_dimension_numbers<[1], [1], [0], [0], [0, 0, 1, 0], [], []>} : vector<16x32xf32>, vector<64x32xf32>, vector<16x64xf32> -> vector<16x64xf32>
    %49 = arith.subf %48, %2 : vector<16x64xf32>
    %cst_25 = arith.constant dense<0xFF800000> : vector<16xf32>
    %50 = vector.multi_reduction <maximumf>, %49, %cst_25 [1] : vector<16x64xf32> to vector<16xf32>
    %51 = vector.shape_cast %50 : vector<16xf32> to vector<16x1xf32>
    %52 = vector.broadcast %51 : vector<16x1xf32> to vector<16x64xf32>
    %53 = arith.subf %49, %52 : vector<16x64xf32>
    %54 = math.exp %53 : vector<16x64xf32>
    %cst_26 = arith.constant dense<0.000000e+00> : vector<16x32xf32>
    %55 = tpu.matmul %54, %47, %cst_26 {dimension_numbers = #tpu.dot_dimension_numbers<[1], [0], [0], [1], [0, 0, 1, 1], [], []>} : vector<16x64xf32>, vector<64x32xf32>, vector<16x32xf32> -> vector<16x32xf32>
    %cst_27 = arith.constant dense<0.000000e+00> : vector<16x32xf32>
    %56 = tpu.matmul %54, %1, %cst_27 {dimension_numbers = #tpu.dot_dimension_numbers<[1], [0], [0], [1], [0, 0, 1, 1], [], []>} : vector<16x64xf32>, vector<64x32xf32>, vector<16x32xf32> -> vector<16x32xf32>
    %57 = tpu.reciprocal %56 {approx = true} : vector<16x32xf32> -> vector<16x32xf32>
    %58 = arith.mulf %55, %57 : vector<16x32xf32>
    %c96 = arith.constant 96 : index
    %c0_28 = arith.constant 0 : index
    %59 = vector.load %arg3[%c96, %c0_28] : memref<584x64xf32, #tpu.memory_space<vmem>>, vector<32x32xf32>
    %cst_29 = arith.constant dense<0.000000e+00> : vector<16x32xf32>
    %60 = tpu.matmul %58, %59, %cst_29 {dimension_numbers = #tpu.dot_dimension_numbers<[1], [0], [0], [1], [0, 0, 1, 1], [], []>} : vector<16x32xf32>, vector<32x32xf32>, vector<16x32xf32> -> vector<16x32xf32>
    %c563 = arith.constant 563 : index
    %c0_30 = arith.constant 0 : index
    %61 = vector.load %arg3[%c563, %c0_30] : memref<584x64xf32, #tpu.memory_space<vmem>>, vector<1x32xf32>
    %62 = vector.broadcast %61 : vector<1x32xf32> to vector<16x32xf32>
    %63 = arith.addf %60, %62 : vector<16x32xf32>
    %64 = arith.addf %63, %3 : vector<16x32xf32>
    %cst_31 = arith.constant dense<0.000000e+00> : vector<16xf32>
    %65 = vector.multi_reduction <add>, %64, %cst_31 [1] : vector<16x32xf32> to vector<16xf32>
    %66 = vector.shape_cast %65 : vector<16xf32> to vector<16x1xf32>
    %cst_32 = arith.constant 3.200000e+01 : f32
    %67 = vector.broadcast %cst_32 : f32 to vector<16x1xf32>
    %68 = arith.divf %66, %67 : vector<16x1xf32>
    %69 = arith.mulf %64, %64 : vector<16x32xf32>
    %cst_33 = arith.constant dense<0.000000e+00> : vector<16xf32>
    %70 = vector.multi_reduction <add>, %69, %cst_33 [1] : vector<16x32xf32> to vector<16xf32>
    %71 = vector.shape_cast %70 : vector<16xf32> to vector<16x1xf32>
    %cst_34 = arith.constant 3.200000e+01 : f32
    %72 = vector.broadcast %cst_34 : f32 to vector<16x1xf32>
    %73 = arith.divf %71, %72 : vector<16x1xf32>
    %74 = arith.mulf %68, %68 : vector<16x1xf32>
    %75 = arith.subf %73, %74 : vector<16x1xf32>
    %76 = vector.broadcast %68 : vector<16x1xf32> to vector<16x32xf32>
    %77 = arith.subf %64, %76 : vector<16x32xf32>
    %cst_35 = arith.constant 9.99999997E-7 : f32
    %78 = vector.broadcast %cst_35 : f32 to vector<16x1xf32>
    %79 = arith.addf %75, %78 : vector<16x1xf32>
    %80 = math.rsqrt %79 : vector<16x1xf32>
    %81 = vector.broadcast %80 : vector<16x1xf32> to vector<16x32xf32>
    %82 = arith.mulf %77, %81 : vector<16x32xf32>
    %c573 = arith.constant 573 : index
    %c0_36 = arith.constant 0 : index
    %83 = vector.load %arg3[%c573, %c0_36] : memref<584x64xf32, #tpu.memory_space<vmem>>, vector<1x32xf32>
    %84 = vector.broadcast %83 : vector<1x32xf32> to vector<16x32xf32>
    %85 = arith.mulf %82, %84 : vector<16x32xf32>
    %c574 = arith.constant 574 : index
    %c0_37 = arith.constant 0 : index
    %86 = vector.load %arg3[%c574, %c0_37] : memref<584x64xf32, #tpu.memory_space<vmem>>, vector<1x32xf32>
    %87 = vector.broadcast %86 : vector<1x32xf32> to vector<16x32xf32>
    %88 = arith.addf %85, %87 : vector<16x32xf32>
    %cst_38 = arith.constant dense<0.000000e+00> : vector<16xf32>
    %89 = vector.multi_reduction <add>, %4, %cst_38 [1] : vector<16x32xf32> to vector<16xf32>
    %90 = vector.shape_cast %89 : vector<16xf32> to vector<16x1xf32>
    %cst_39 = arith.constant 3.200000e+01 : f32
    %91 = vector.broadcast %cst_39 : f32 to vector<16x1xf32>
    %92 = arith.divf %90, %91 : vector<16x1xf32>
    %93 = arith.mulf %4, %4 : vector<16x32xf32>
    %cst_40 = arith.constant dense<0.000000e+00> : vector<16xf32>
    %94 = vector.multi_reduction <add>, %93, %cst_40 [1] : vector<16x32xf32> to vector<16xf32>
    %95 = vector.shape_cast %94 : vector<16xf32> to vector<16x1xf32>
    %cst_41 = arith.constant 3.200000e+01 : f32
    %96 = vector.broadcast %cst_41 : f32 to vector<16x1xf32>
    %97 = arith.divf %95, %96 : vector<16x1xf32>
    %98 = arith.mulf %92, %92 : vector<16x1xf32>
    %99 = arith.subf %97, %98 : vector<16x1xf32>
    %100 = vector.broadcast %92 : vector<16x1xf32> to vector<16x32xf32>
    %101 = arith.subf %4, %100 : vector<16x32xf32>
    %cst_42 = arith.constant 9.99999997E-7 : f32
    %102 = vector.broadcast %cst_42 : f32 to vector<16x1xf32>
    %103 = arith.addf %99, %102 : vector<16x1xf32>
    %104 = math.rsqrt %103 : vector<16x1xf32>
    %105 = vector.broadcast %104 : vector<16x1xf32> to vector<16x32xf32>
    %106 = arith.mulf %101, %105 : vector<16x32xf32>
    %c573_43 = arith.constant 573 : index
    %c0_44 = arith.constant 0 : index
    %107 = vector.load %arg3[%c573_43, %c0_44] : memref<584x64xf32, #tpu.memory_space<vmem>>, vector<1x32xf32>
    %108 = vector.broadcast %107 : vector<1x32xf32> to vector<16x32xf32>
    %109 = arith.mulf %106, %108 : vector<16x32xf32>
    %c574_45 = arith.constant 574 : index
    %c0_46 = arith.constant 0 : index
    %110 = vector.load %arg3[%c574_45, %c0_46] : memref<584x64xf32, #tpu.memory_space<vmem>>, vector<1x32xf32>
    %111 = vector.broadcast %110 : vector<1x32xf32> to vector<16x32xf32>
    %112 = arith.addf %109, %111 : vector<16x32xf32>
    %c128 = arith.constant 128 : index
    %c0_47 = arith.constant 0 : index
    %113 = vector.load %arg3[%c128, %c0_47] : memref<584x64xf32, #tpu.memory_space<vmem>>, vector<32x32xf32>
    %cst_48 = arith.constant dense<0.000000e+00> : vector<16x32xf32>
    %114 = tpu.matmul %88, %113, %cst_48 {dimension_numbers = #tpu.dot_dimension_numbers<[1], [0], [0], [1], [0, 0, 1, 1], [], []>} : vector<16x32xf32>, vector<32x32xf32>, vector<16x32xf32> -> vector<16x32xf32>
    %c564 = arith.constant 564 : index
    %c0_49 = arith.constant 0 : index
    %115 = vector.load %arg3[%c564, %c0_49] : memref<584x64xf32, #tpu.memory_space<vmem>>, vector<1x32xf32>
    %116 = vector.broadcast %115 : vector<1x32xf32> to vector<16x32xf32>
    %117 = arith.addf %114, %116 : vector<16x32xf32>
    %c160 = arith.constant 160 : index
    %c0_50 = arith.constant 0 : index
    %118 = vector.load %arg3[%c160, %c0_50] : memref<584x64xf32, #tpu.memory_space<vmem>>, vector<32x32xf32>
    %cst_51 = arith.constant dense<0.000000e+00> : vector<16x32xf32>
    %119 = tpu.matmul %112, %118, %cst_51 {dimension_numbers = #tpu.dot_dimension_numbers<[1], [0], [0], [1], [0, 0, 1, 1], [], []>} : vector<16x32xf32>, vector<32x32xf32>, vector<16x32xf32> -> vector<16x32xf32>
    %c565 = arith.constant 565 : index
    %c0_52 = arith.constant 0 : index
    %120 = vector.load %arg3[%c565, %c0_52] : memref<584x64xf32, #tpu.memory_space<vmem>>, vector<1x32xf32>
    %121 = vector.broadcast %120 : vector<1x32xf32> to vector<16x32xf32>
    %122 = arith.addf %119, %121 : vector<16x32xf32>
    %c192 = arith.constant 192 : index
    %c0_53 = arith.constant 0 : index
    %123 = vector.load %arg3[%c192, %c0_53] : memref<584x64xf32, #tpu.memory_space<vmem>>, vector<32x32xf32>
    %cst_54 = arith.constant dense<0.000000e+00> : vector<16x32xf32>
    %124 = tpu.matmul %112, %123, %cst_54 {dimension_numbers = #tpu.dot_dimension_numbers<[1], [0], [0], [1], [0, 0, 1, 1], [], []>} : vector<16x32xf32>, vector<32x32xf32>, vector<16x32xf32> -> vector<16x32xf32>
    %c566 = arith.constant 566 : index
    %c0_55 = arith.constant 0 : index
    %125 = vector.load %arg3[%c566, %c0_55] : memref<584x64xf32, #tpu.memory_space<vmem>>, vector<1x32xf32>
    %126 = vector.broadcast %125 : vector<1x32xf32> to vector<16x32xf32>
    %127 = arith.addf %124, %126 : vector<16x32xf32>
    %cst_56 = arith.constant dense<0.000000e+00> : vector<64x32xf32>
    %128 = tpu.matmul %0, %122, %cst_56 {dimension_numbers = #tpu.dot_dimension_numbers<[1], [0], [0], [1], [0, 0, 1, 1], [], []>} : vector<64x16xf32>, vector<16x32xf32>, vector<64x32xf32> -> vector<64x32xf32>
    %129 = arith.mulf %128, %1 : vector<64x32xf32>
    %cst_57 = arith.constant dense<0.000000e+00> : vector<64x32xf32>
    %130 = tpu.matmul %0, %127, %cst_57 {dimension_numbers = #tpu.dot_dimension_numbers<[1], [0], [0], [1], [0, 0, 1, 1], [], []>} : vector<64x16xf32>, vector<16x32xf32>, vector<64x32xf32> -> vector<64x32xf32>
    %131 = arith.mulf %130, %1 : vector<64x32xf32>
    %cst_58 = arith.constant dense<0.000000e+00> : vector<16x64xf32>
    %132 = tpu.matmul %117, %129, %cst_58 {dimension_numbers = #tpu.dot_dimension_numbers<[1], [1], [0], [0], [0, 0, 1, 0], [], []>} : vector<16x32xf32>, vector<64x32xf32>, vector<16x64xf32> -> vector<16x64xf32>
    %133 = arith.subf %132, %2 : vector<16x64xf32>
    %cst_59 = arith.constant dense<0xFF800000> : vector<16xf32>
    %134 = vector.multi_reduction <maximumf>, %133, %cst_59 [1] : vector<16x64xf32> to vector<16xf32>
    %135 = vector.shape_cast %134 : vector<16xf32> to vector<16x1xf32>
    %136 = vector.broadcast %135 : vector<16x1xf32> to vector<16x64xf32>
    %137 = arith.subf %133, %136 : vector<16x64xf32>
    %138 = math.exp %137 : vector<16x64xf32>
    %cst_60 = arith.constant dense<0.000000e+00> : vector<16x32xf32>
    %139 = tpu.matmul %138, %131, %cst_60 {dimension_numbers = #tpu.dot_dimension_numbers<[1], [0], [0], [1], [0, 0, 1, 1], [], []>} : vector<16x64xf32>, vector<64x32xf32>, vector<16x32xf32> -> vector<16x32xf32>
    %cst_61 = arith.constant dense<0.000000e+00> : vector<16x32xf32>
    %140 = tpu.matmul %138, %1, %cst_61 {dimension_numbers = #tpu.dot_dimension_numbers<[1], [0], [0], [1], [0, 0, 1, 1], [], []>} : vector<16x64xf32>, vector<64x32xf32>, vector<16x32xf32> -> vector<16x32xf32>
    %141 = tpu.reciprocal %140 {approx = true} : vector<16x32xf32> -> vector<16x32xf32>
    %142 = arith.mulf %139, %141 : vector<16x32xf32>
    %c224 = arith.constant 224 : index
    %c0_62 = arith.constant 0 : index
    %143 = vector.load %arg3[%c224, %c0_62] : memref<584x64xf32, #tpu.memory_space<vmem>>, vector<32x32xf32>
    %cst_63 = arith.constant dense<0.000000e+00> : vector<16x32xf32>
    %144 = tpu.matmul %142, %143, %cst_63 {dimension_numbers = #tpu.dot_dimension_numbers<[1], [0], [0], [1], [0, 0, 1, 1], [], []>} : vector<16x32xf32>, vector<32x32xf32>, vector<16x32xf32> -> vector<16x32xf32>
    %c567 = arith.constant 567 : index
    %c0_64 = arith.constant 0 : index
    %145 = vector.load %arg3[%c567, %c0_64] : memref<584x64xf32, #tpu.memory_space<vmem>>, vector<1x32xf32>
    %146 = vector.broadcast %145 : vector<1x32xf32> to vector<16x32xf32>
    %147 = arith.addf %144, %146 : vector<16x32xf32>
    %c256 = arith.constant 256 : index
    %c0_65 = arith.constant 0 : index
    %148 = vector.load %arg3[%c256, %c0_65] : memref<584x64xf32, #tpu.memory_space<vmem>>, vector<32x32xf32>
    %cst_66 = arith.constant dense<0.000000e+00> : vector<16x32xf32>
    %149 = tpu.matmul %147, %148, %cst_66 {dimension_numbers = #tpu.dot_dimension_numbers<[1], [0], [0], [1], [0, 0, 1, 1], [], []>} : vector<16x32xf32>, vector<32x32xf32>, vector<16x32xf32> -> vector<16x32xf32>
    %c288 = arith.constant 288 : index
    %c0_67 = arith.constant 0 : index
    %150 = vector.load %arg3[%c288, %c0_67] : memref<584x64xf32, #tpu.memory_space<vmem>>, vector<32x32xf32>
    %cst_68 = arith.constant dense<0.000000e+00> : vector<16x32xf32>
    %151 = tpu.matmul %64, %150, %cst_68 {dimension_numbers = #tpu.dot_dimension_numbers<[1], [0], [0], [1], [0, 0, 1, 1], [], []>} : vector<16x32xf32>, vector<32x32xf32>, vector<16x32xf32> -> vector<16x32xf32>
    %152 = arith.addf %149, %151 : vector<16x32xf32>
    %c568 = arith.constant 568 : index
    %c0_69 = arith.constant 0 : index
    %153 = vector.load %arg3[%c568, %c0_69] : memref<584x64xf32, #tpu.memory_space<vmem>>, vector<1x32xf32>
    %154 = vector.broadcast %153 : vector<1x32xf32> to vector<16x32xf32>
    %155 = arith.addf %152, %154 : vector<16x32xf32>
    %156 = arith.negf %155 : vector<16x32xf32>
    %157 = math.exp %156 : vector<16x32xf32>
    %cst_70 = arith.constant 1.000000e+00 : f32
    %158 = vector.broadcast %cst_70 : f32 to vector<16x32xf32>
    %159 = arith.addf %158, %157 : vector<16x32xf32>
    %160 = arith.divf %158, %159 : vector<16x32xf32>
    %161 = arith.mulf %160, %147 : vector<16x32xf32>
    %162 = arith.addf %161, %64 : vector<16x32xf32>
    %cst_71 = arith.constant dense<0.000000e+00> : vector<16xf32>
    %163 = vector.multi_reduction <add>, %162, %cst_71 [1] : vector<16x32xf32> to vector<16xf32>
    %164 = vector.shape_cast %163 : vector<16xf32> to vector<16x1xf32>
    %cst_72 = arith.constant 3.200000e+01 : f32
    %165 = vector.broadcast %cst_72 : f32 to vector<16x1xf32>
    %166 = arith.divf %164, %165 : vector<16x1xf32>
    %167 = arith.mulf %162, %162 : vector<16x32xf32>
    %cst_73 = arith.constant dense<0.000000e+00> : vector<16xf32>
    %168 = vector.multi_reduction <add>, %167, %cst_73 [1] : vector<16x32xf32> to vector<16xf32>
    %169 = vector.shape_cast %168 : vector<16xf32> to vector<16x1xf32>
    %cst_74 = arith.constant 3.200000e+01 : f32
    %170 = vector.broadcast %cst_74 : f32 to vector<16x1xf32>
    %171 = arith.divf %169, %170 : vector<16x1xf32>
    %172 = arith.mulf %166, %166 : vector<16x1xf32>
    %173 = arith.subf %171, %172 : vector<16x1xf32>
    %174 = vector.broadcast %166 : vector<16x1xf32> to vector<16x32xf32>
    %175 = arith.subf %162, %174 : vector<16x32xf32>
    %cst_75 = arith.constant 9.99999997E-7 : f32
    %176 = vector.broadcast %cst_75 : f32 to vector<16x1xf32>
    %177 = arith.addf %173, %176 : vector<16x1xf32>
    %178 = math.rsqrt %177 : vector<16x1xf32>
    %179 = vector.broadcast %178 : vector<16x1xf32> to vector<16x32xf32>
    %180 = arith.mulf %175, %179 : vector<16x32xf32>
    %c575 = arith.constant 575 : index
    %c0_76 = arith.constant 0 : index
    %181 = vector.load %arg3[%c575, %c0_76] : memref<584x64xf32, #tpu.memory_space<vmem>>, vector<1x32xf32>
    %182 = vector.broadcast %181 : vector<1x32xf32> to vector<16x32xf32>
    %183 = arith.mulf %180, %182 : vector<16x32xf32>
    %c576 = arith.constant 576 : index
    %c0_77 = arith.constant 0 : index
    %184 = vector.load %arg3[%c576, %c0_77] : memref<584x64xf32, #tpu.memory_space<vmem>>, vector<1x32xf32>
    %185 = vector.broadcast %184 : vector<1x32xf32> to vector<16x32xf32>
    %186 = arith.addf %183, %185 : vector<16x32xf32>
    %c320 = arith.constant 320 : index
    %c0_78 = arith.constant 0 : index
    %187 = vector.load %arg3[%c320, %c0_78] : memref<584x64xf32, #tpu.memory_space<vmem>>, vector<32x64xf32>
    %cst_79 = arith.constant dense<0.000000e+00> : vector<16x64xf32>
    %188 = tpu.matmul %186, %187, %cst_79 {dimension_numbers = #tpu.dot_dimension_numbers<[1], [0], [0], [1], [0, 0, 1, 1], [], []>} : vector<16x32xf32>, vector<32x64xf32>, vector<16x64xf32> -> vector<16x64xf32>
    %c569 = arith.constant 569 : index
    %c0_80 = arith.constant 0 : index
    %189 = vector.load %arg3[%c569, %c0_80] : memref<584x64xf32, #tpu.memory_space<vmem>>, vector<1x64xf32>
    %190 = vector.broadcast %189 : vector<1x64xf32> to vector<16x64xf32>
    %191 = arith.addf %188, %190 : vector<16x64xf32>
    %cst_81 = arith.constant 5.000000e-01 : f32
    %192 = vector.broadcast %cst_81 : f32 to vector<16x64xf32>
    %193 = arith.mulf %192, %191 : vector<16x64xf32>
    %cst_82 = arith.constant 0.707106769 : f32
    %194 = vector.broadcast %cst_82 : f32 to vector<16x64xf32>
    %195 = arith.mulf %191, %194 : vector<16x64xf32>
    %196 = math.erf %195 : vector<16x64xf32>
    %cst_83 = arith.constant 1.000000e+00 : f32
    %197 = vector.broadcast %cst_83 : f32 to vector<16x64xf32>
    %198 = arith.addf %197, %196 : vector<16x64xf32>
    %199 = arith.mulf %193, %198 : vector<16x64xf32>
    %c352 = arith.constant 352 : index
    %c0_84 = arith.constant 0 : index
    %200 = vector.load %arg3[%c352, %c0_84] : memref<584x64xf32, #tpu.memory_space<vmem>>, vector<64x32xf32>
    %cst_85 = arith.constant dense<0.000000e+00> : vector<16x32xf32>
    %201 = tpu.matmul %199, %200, %cst_85 {dimension_numbers = #tpu.dot_dimension_numbers<[1], [0], [0], [1], [0, 0, 1, 1], [], []>} : vector<16x64xf32>, vector<64x32xf32>, vector<16x32xf32> -> vector<16x32xf32>
    %c570 = arith.constant 570 : index
    %c0_86 = arith.constant 0 : index
    %202 = vector.load %arg3[%c570, %c0_86] : memref<584x64xf32, #tpu.memory_space<vmem>>, vector<1x32xf32>
    %203 = vector.broadcast %202 : vector<1x32xf32> to vector<16x32xf32>
    %204 = arith.addf %201, %203 : vector<16x32xf32>
    %205 = arith.addf %204, %162 : vector<16x32xf32>
    %c0_87 = arith.constant 0 : index
    %c0_88 = arith.constant 0 : index
    %206 = vector.load %arg4[%c0_87, %c0_88] : memref<16x32xf32, #tpu.memory_space<vmem>>, vector<16x32xf32>
    tpu.vector_store %arg4[%c0_87, %c0_88], %205 {strides = array<i32>} : memref<16x32xf32, #tpu.memory_space<vmem>>, vector<16x32xf32>,
    return
  }
  func.func @transform_0(%arg0: i32) -> (i32, i32) {
    %c0_i32 = arith.constant 0 : i32
    %c0_i32_0 = arith.constant 0 : i32
    %c0_i32_1 = arith.constant 0 : i32
    return %c0_i32, %c0_i32_0 : i32, i32
  }
  func.func @transform_1(%arg0: i32) -> (i32, i32) {
    %c0_i32 = arith.constant 0 : i32
    %c0_i32_0 = arith.constant 0 : i32
    %c0_i32_1 = arith.constant 0 : i32
    return %c0_i32, %c0_i32_0 : i32, i32
  }
  func.func @transform_2(%arg0: i32) -> (i32, i32) {
    %c0_i32 = arith.constant 0 : i32
    %c0_i32_0 = arith.constant 0 : i32
    %c0_i32_1 = arith.constant 0 : i32
    return %c0_i32, %c0_i32_0 : i32, i32
  }
  func.func @transform_3(%arg0: i32) -> (i32, i32) {
    %c0_i32 = arith.constant 0 : i32
    %c0_i32_0 = arith.constant 0 : i32
    %c0_i32_1 = arith.constant 0 : i32
    return %c0_i32, %c0_i32_0 : i32, i32
  }
}

</mosaic_0001>

<bundles_post_ra>
// kernel: tpu_custom_call.1
= control target key start
LH: loop header
LB: loop body
LE: loop exit
PB: predicated region body
PF: predicated region fallthrough
CT: control target
= control target key end

     0   :  { %vm37_vm0 = vcmask 261120   ;;  %s3905_s0 = inlined_call_operand.vmem [shape: f32[16,32], index: 0, kind: input, shape index: {}]   ;;  %s3906_s1 = inlined_call_operand.vmem [shape: f32[16,32], index: 1, kind: input, shape index: {}]   ;;  %s3907_s2 = inlined_call_operand.vmem [shape: f32[584,64], index: 2, kind: input, shape index: {}]   ;;  %s3908_s3 = inlined_call_operand.hbm [shape: f32[16,32], index: 3, kind: output, shape index: {}]  }
   0x1   :  { %v3280_v0 = vld [vmem:[%s3905_s0] sm:$0xff]  ;;  %v3285_v1 = vld [vmem:[%s3905_s0 + $0x8] sm:$0xff] }
   0x2   :  { %8 = vsyncpa [#allocation3], 0  ;;  %v38_v2 = vsel %vm37_vm0, %v3280_v0, 0.0  ;;  %v47_v3 = vmul.f32 %v3280_v0, %v3280_v0  ;;  %v48_v4 = vmul.f32 %v3285_v1, %v3285_v1  ;;  %v41_v6 = vsel %vm37_vm0, %v3285_v1, 0.0  ;;  %v83_v8 = vld [vmem:[%s3907_s2] sm:$0xff]  ;;  %v84_v9 = vld [vmem:[%s3907_s2 + $0x8] sm:$0xff] }
   0x3   :  { %39 = vadd.xlane.f32.xlu0 %v38_v2  ;;  %v173_v10 = vld [vmem:[%s3907_s2 + $0x20] sm:$0xff]  ;;  %v2949_v11 = vpack.c.bf16 %v84_v9, %v83_v8  ;;  %v174_v12 = vld [vmem:[%s3907_s2 + $0x28] sm:$0xff]  ;;  %v85_v13 = vld [vmem:[%s3907_s2 + $0x10] sm:$0xff]  ;;  %vm341_vm1 = vcmask 130048   ;;  %vm699_vm3 = vcmask 523264   ;;  %s3254_s21 = smov [#allocation2]  }
   0x4   :  { %v49_v5 = vsel %vm37_vm0, %v47_v3, 0.0  ;;  %v52_v7 = vsel %vm37_vm0, %v48_v4, 0.0  ;;  %v86_v14 = vld [vmem:[%s3907_s2 + $0x18] sm:$0xff]  ;;  %v2957_v15 = vpack.c.bf16 %v174_v12, %v173_v10  ;;  %v175_v17 = vld [vmem:[%s3907_s2 + $0x30] sm:$0xff]  ;;  %v257_v20 = vld [vmem:[%s3907_s2 + $0x40] sm:$0xff]  ;;  %s2341_s22 = sshll.u32 %s3254_s21, 4  ;;  %s2342_s22 = int_to_ptr.vmem [resolvable:$true] %s2341_s22 }
   0x5   :  { %50 = vadd.xlane.f32.xlu1 %v49_v5  ;;  %v2953_v16 = vpack.c.bf16 %v86_v14, %v85_v13  ;;  %2950 = vmatprep.subr.bf16.mxu0 %v2949_v11  ;;  %v176_v18 = vld [vmem:[%s3907_s2 + $0x38] sm:$0xff]  ;;  %v258_v21 = vld [vmem:[%s3907_s2 + $0x48] sm:$0xff]  ;;  %v259_v47 = vld [vmem:[%s3907_s2 + $0x50] sm:$0xff]  ;;  %s3230_s23 = scalar_lea.vmem %s2342_s22, 256  ;;  %p3235_p1 = scmp.lt.s32.totalorder %s2342_s22, %s2342_s22 }
   0x6   :  { %2952 = vmatpush3.bf16.msra.mxu0 %v2949_v11  ;;  %2958 = vmatprep.subr.bf16.mxu1 %v2957_v15  ;;  %v2961_v19 = vpack.c.bf16 %v176_v18, %v175_v17  ;;  %v2965_v22 = vpack.c.bf16 %v258_v21, %v257_v20  ;;  %v2352_v39 = vld [vmem:[%s3907_s2 + $0x23b] ss:$0 sm:$0xff]  ;;  %v2353_v41 = vld [vmem:[%s3907_s2 + $0x23c] ss:$0 sm:$0xff]  ;;  %v3350_v52 = vld [vmem:[%s3907_s2 + $0x1a0] sm:$0xff]  ;;  %p3231_p0 = scmp.ne.s32.totalorder %s2342_s22, %s3230_s23  ;;  %p3236_p2 = scmp.lt.s32.totalorder %s3230_s23, %s3230_s23 }
   0x7   :  { %42 = vadd.xlane.f32.xlu0 %v41_v6  ;;  %2960 = vmatpush3.bf16.msra.mxu1 %v2957_v15  ;;  %v260_v48 = vld [vmem:[%s3907_s2 + $0x58] sm:$0xff]  ;;  %v2354_v53 = vld [vmem:[%s3907_s2 + $0x230] ss:$0 sm:$0xff]  ;;  %v2357_v54 = vld [vmem:[%s3907_s2 + $0x231] ss:$0 sm:$0xff] }
   0x8   :  { %2954 = vmatprep.subr.bf16.mxu0 %v2953_v16  ;;  %2962 = vmatprep.subr.bf16.mxu1 %v2961_v19  ;;  %v2969_v51 = vpack.c.bf16 %v260_v48, %v259_v47  ;;  %v2360_v63 = vld [vmem:[%s3907_s2 + $0x232] ss:$0 sm:$0xff]  ;;  %v3370_v2 = vld [vmem:[%s3907_s2 + $0x1a8] sm:$0xff]  ;;  %v3384_v8 = vld [vmem:[%s3907_s2 + $0x1b8] sm:$0xff]  ;;  %p3237_p3 = por %p3236_p2, %p3235_p1 }
   0x9   :  { %53 = vadd.xlane.f32.xlu1 %v52_v7  ;;  %v3375_v4 = vld [vmem:[%s3907_s2 + $0x1b0] sm:$0xff]  ;;  %v3389_v10 = vld [vmem:[%s3907_s2 + $0x1c0] sm:$0xff]  ;;  %v3398_v11 = vld [vmem:[%s3907_s2 + $0x1c8] sm:$0xff] }
   0xa   :  { %2956 = vmatpush3.bf16.msra.mxu0 %v2953_v16  ;;  %v3403_v12 = vld [vmem:[%s3907_s2 + $0x1d0] sm:$0xff]  ;;  %v3414_v13 = vld [vmem:[%s3907_s2 + $0x1d8] sm:$0xff]  ;;  %v3434_v15 = vld [vmem:[%s3907_s2 + $0x1e8] sm:$0xff]  ;;  %p3238_p4 = pnand %p3237_p3, %p3231_p0 }
   0xb   :  { %2964 = vmatpush3.bf16.msra.mxu1 %v2961_v19  ;;  %2966 = vmatprep.subr.bf16.mxu0 %v2965_v22  ;;  %v3439_v16 = vld [vmem:[%s3907_s2 + $0x1e0] sm:$0xff]  ;;  %v3446_v21 = vld [vmem:[%s3907_s2 + $0x1f8] sm:$0xff]  ;;  %vm3450_vm2 = vmpackc.low %vm37_vm0, %vm37_vm0 }
  0x90   :  { %v40_v23 = vpop.xlane.xlu0 %39 }
  0x91   :  { %v45_v24 = vmul.f32 0.03125, %v40_v23  ;;  %v3457_v23 = vld [vmem:[%s3907_s2 + $0x1f0] sm:$0xff] }
  0x92   :  { %v51_v25 = vpop.xlane.xlu1 %50 }
  0x93   :  { %v57_v26 = vmul.f32 %v45_v24, %v45_v24  ;;  %v55_v27 = vmul.f32 0.03125, %v51_v25  ;;  %v61_v37 = vsub.f32 %v3280_v0, %v45_v24 }
  0x94   :  { %v43_v28 = vpop.xlane.xlu0 %42 }
  0x95   :  { %v59_v29 = vsub.f32 %v55_v27, %v57_v26  ;;  %v46_v30 = vmul.f32 0.03125, %v43_v28 }
  0x96   :  { %v54_v31 = vpop.xlane.xlu1 %53 }
  0x97   :  { %v63_v32 = vadd.f32 1e-06, %v59_v29  ;;  %v58_v33 = vmul.f32 %v46_v30, %v46_v30  ;;  %v56_v34 = vmul.f32 0.03125, %v54_v31  ;;  %v62_v42 = vsub.f32 %v3285_v1, %v46_v30  ;;  %v3466_v29 = vld [vmem:[%s3907_s2 + $0x208] sm:$0xff]  ;;  %v3473_v30 = vld [vmem:[%s3907_s2 + $0x200] sm:$0xff] }
  0x99   :  { %3186 = vrsqrt.f32 %v63_v32  ;;  %v60_v35 = vsub.f32 %v56_v34, %v58_v33 }
  0x9b   :  { %v64_v36 = vadd.f32 1e-06, %v60_v35 }
  0x9d   :  { %3188 = vrsqrt.f32 %v64_v36  ;;  %v3482_v36 = vld [vmem:[%s3907_s2 + $0x218] sm:$0xff] }
  0xa3   :  { %v3187_v38 = vpop.eup %3186 }
  0xa4   :  { %v67_v40 = vmul.f32 %v3187_v38, %v61_v37  ;;  %v3487_v37 = vld [vmem:[%s3907_s2 + $0x210] sm:$0xff] }
  0xa6   :  { %v74_v43 = vmul.f32 %v2352_v39, %v67_v40 }
  0xa7   :  { %v3189_v44 = vpop.eup %3188 }
  0xa8   :  { %v68_v45 = vmul.f32 %v3189_v44, %v62_v42  ;;  %v81_v46 = vadd.f32 %v2353_v41, %v74_v43 }
  0xaa   :  { %v75_v49 = vmul.f32 %v2352_v39, %v68_v45  ;;  %2639 = vmatprep.mubr.msk.f32.mxu0 %vm37_vm0, %v81_v46  ;;  %2650 = vmatprep.mubr.msk.f32.mxu1 %vm37_vm0, %v81_v46 }
  0xac   :  { %v82_v50 = vadd.f32 %v2353_v41, %v75_v49 }
  0xae   :  { %2640 = vmatmul.mubr.msk.f32.vlgmr.msra.gmra.mrb[0].mxu0 %vm37_vm0, %v82_v50  ;;  %2651 = vmatmul.mubr.msk.f32.vlgmr.msra.gmra.mrb[0].mxu1 %vm37_vm0, %v82_v50 }
  0xaf   :  { %2968 = vmatpush3.bf16.msra.mxu0 %v2965_v22  ;;  %2661 = vmatprep.mubr.msk.f32.mxu0 %vm37_vm0, %v81_v46 }
  0xb0   :  { %2970 = vmatprep.subr.bf16.mxu0 %v2969_v51  ;;  %2668 = vmatprep.mubr.msk.f32.mxu1 %vm341_vm1, %v3350_v52 }
  0xb3   :  { %2972 = vmatpush3.bf16.msra.mxu0 %v2969_v51 }
  0xb6   :  { %2662 = vmatmul.mubr.msk.f32.vlgmr.msra.gmra.mrb[2].mxu0 %vm37_vm0, %v82_v50 }
  0xb7   :  { %2684 = vmatprep.mubr.msk.f32.mxu0 %vm341_vm1, %v3350_v52 }
 0x181   :  { %v2641_v55 = vpop.f32.mrb[0].mxu0  ;;  %v2652_v56 = vpop.f32.mrb[0].mxu1 }
 0x182   :  { %v3362_v57 = vadd.f32 %v2641_v55, %v2354_v53  ;;  %v254_v58 = vadd.f32 %v2652_v56, %v2357_v54  ;;  %v164_v59 = vpop.f32.mrb[1].mxu0  ;;  %v248_v60 = vpop.f32.mrb[1].mxu1  ;;  %v3510_v55 = vld [vmem:[%s3907_s2 + $0x228] sm:$0xff]  ;;  %v3515_v56 = vld [vmem:[%s3907_s2 + $0x220] sm:$0xff] }
 0x183   :  { %v249_v61 = vadd.f32 %v2357_v54, %v248_v60  ;;  %v165_v14 = vadd.f32 %v2354_v53, %v164_v59 }
 0x185   :  { %v2973_v62 = vpack.c.bf16 %v254_v58, %v249_v61 }
 0x187   :  { %2974 = vmatprep.subr.bf16.mxu1 %v2973_v62 }
 0x188   :  { %2976 = vmatpush3.bf16.msra.mxu1 %v2973_v62 }
 0x189   :  { %v2663_v3 = vpop.f32.mrb[2].mxu0 }
 0x18a   :  { %v338_v5 = vadd.f32 %v2663_v3, %v2360_v63  ;;  %v332_v6 = vpop.f32.mrb[3].mxu0 }
 0x18b   :  { %v333_v7 = vadd.f32 %v2360_v63, %v332_v6  ;;  %2669 = vmatmul.mubr.msk.f32.vlgmr.msra.gmra.mrb[2].mxu1 %vm341_vm1, %v3370_v2 }
 0x18c   :  { %2671 = vmatprep.mubr.msk.f32.mxu1 %vm341_vm1, %v3375_v4 }
 0x18d   :  { %v2977_v9 = vpack.c.bf16 %v338_v5, %v333_v7 }
 0x18f   :  { %2978 = vmatprep.subr.bf16.mxu0 %v2977_v9  ;;  %2672 = vmatmul.mubr.msk.f32.gmra.mrb[4].mxu1 %vm341_vm1, %v3384_v8 }
 0x190   :  { %2980 = vmatpush3.bf16.msra.mxu0 %v2977_v9  ;;  %2674 = vmatprep.mubr.msk.f32.mxu1 %vm341_vm1, %v3389_v10 }
 0x193   :  { %2675 = vmatmul.mubr.msk.f32.gmra.mrb[6].mxu1 %vm341_vm1, %v3398_v11  ;;  %2685 = vmatmul.mubr.msk.f32.vlgmr.msra.gmra.mrb[4].mxu0 %vm341_vm1, %v3370_v2 }
 0x194   :  { %2677 = vmatprep.mubr.msk.f32.mxu1 %vm341_vm1, %v3403_v12  ;;  %2687 = vmatprep.mubr.msk.f32.mxu0 %vm341_vm1, %v3375_v4 }
 0x197   :  { %2678 = vmatmul.mubr.msk.f32.gmra.mrb[8].mxu1 %vm341_vm1, %v3414_v13  ;;  %2688 = vmatmul.mubr.msk.f32.gmra.mrb[6].mxu0 %vm341_vm1, %v3384_v8 }
 0x198   :  { %2712 = vmatprep.mubr.msk.f32.mxu1 %vm37_vm0, %v165_v14  ;;  %2690 = vmatprep.mubr.msk.f32.mxu0 %vm341_vm1, %v3389_v10 }
 0x19b   :  { %2691 = vmatmul.mubr.msk.f32.gmra.mrb[8].mxu0 %vm341_vm1, %v3398_v11 }
 0x19c   :  { %2693 = vmatprep.mubr.msk.f32.mxu0 %vm341_vm1, %v3403_v12 }
 0x19f   :  { %2694 = vmatmul.mubr.msk.f32.gmra.mrb[10].mxu0 %vm341_vm1, %v3414_v13 }
 0x25e   :  { %v2670_v17 = vpop.f32.mrb[2].mxu1 }
 0x25f   :  { %v472_v18 = vmul.f32 %v2670_v17, %v3434_v15  ;;  %v432_v19 = vpop.f32.mrb[3].mxu1 }
 0x260   :  { %v471_v20 = vmul.f32 %v432_v19, %v3439_v16 }
 0x262   :  { %v2981_v24 = vpack.c.bf16 %v472_v18, %v471_v20  ;;  %v2673_v25 = vpop.f32.mrb[4].mxu1  ;;  %v3527_v20 = vpack.c.bf16 %v3434_v15, %v3439_v16 }
 0x263   :  { %v474_v26 = vmul.f32 %v2673_v25, %v3446_v21  ;;  %v442_v27 = vpop.f32.mrb[5].mxu1  ;;  %v3538_v25 = vld [vmem:[%s3906_s1 + $0x8] sm:$0xff] }
 0x264   :  { %2983 = vmatprep.subr.msk.bf16.mxu1 %vm3450_vm2, %v2981_v24  ;;  %v473_v28 = vmul.f32 %v442_v27, %v3457_v23  ;;  %v1011_v27 = vsel %vm37_vm0, %v3538_v25, 0.0 }
 0x265   :  { %2986 = vmatpush3.bf16.xpose.msk.msra.mxu1 %vm3450_vm2, %v2981_v24  ;;  %v3533_v24 = vld [vmem:[%s3906_s1] sm:$0xff] }
 0x266   :  { %v2987_v31 = vpack.c.bf16 %v474_v26, %v473_v28  ;;  %v2676_v32 = vpop.f32.mrb[6].mxu1  ;;  %v2686_v44 = vpop.f32.mrb[4].mxu0  ;;  %v1008_v26 = vsel %vm37_vm0, %v3533_v24, 0.0  ;;  %v1016_v28 = vmul.f32 %v3533_v24, %v3533_v24 }
 0x267   :  { %v476_v33 = vmul.f32 %v2676_v32, %v3466_v29  ;;  %v452_v34 = vpop.f32.mrb[7].mxu1  ;;  %v585_v45 = vmul.f32 %v2686_v44, %v3434_v15  ;;  %v545_v46 = vpop.f32.mrb[5].mxu0 }
 0x268   :  { %2989 = vmatprep.subr.msk.bf16.mxu1 %vm3450_vm2, %v2987_v31  ;;  %v475_v35 = vmul.f32 %v452_v34, %v3473_v30  ;;  %v584_v47 = vmul.f32 %v545_v46, %v3439_v16  ;;  %v1018_v32 = vsel %vm37_vm0, %v1016_v28, 0.0  ;;  %v3567_v46 = vpack.c.bf16 %v3482_v36, %v3487_v37 }
 0x26a   :  { %v2993_v38 = vpack.c.bf16 %v476_v33, %v475_v35  ;;  %v2679_v39 = vpop.f32.mrb[8].mxu1  ;;  %v2689_v48 = vpop.f32.mrb[6].mxu0  ;;  %v3005_v51 = vpack.c.bf16 %v585_v45, %v584_v47  ;;  %v3561_v45 = vpack.c.bf16 %v3466_v29, %v3473_v30  ;;  %v872_v47 = vld [vmem:[%s3907_s2 + $0x60] sm:$0xff] }
 0x26b   :  { %v478_v40 = vmul.f32 %v2679_v39, %v3482_v36  ;;  %v462_v41 = vpop.f32.mrb[9].mxu1  ;;  %v587_v49 = vmul.f32 %v2689_v48, %v3446_v21  ;;  %v555_v50 = vpop.f32.mrb[7].mxu0  ;;  %v873_v48 = vld [vmem:[%s3907_s2 + $0x68] sm:$0xff] }
 0x26c   :  { %v477_v42 = vmul.f32 %v462_v41, %v3487_v37  ;;  %v586_v53 = vmul.f32 %v555_v50, %v3457_v23  ;;  %3006 = vmatprep.subr.bf16.mxu0 %v3005_v51  ;;  %v874_v50 = vld [vmem:[%s3907_s2 + $0x70] sm:$0xff] }
 0x26d   :  { %2992 = vmatpush3.bf16.xpose.msk.msra.mxu1 %vm3450_vm2, %v2987_v31  ;;  %3008 = vmatpush3.bf16.msra.mxu0 %v3005_v51  ;;  %v1017_v31 = vmul.f32 %v3538_v25, %v3538_v25  ;;  %v875_v51 = vld [vmem:[%s3907_s2 + $0x78] sm:$0xff] }
 0x26e   :  { %2995 = vmatprep.subr.msk.bf16.mxu1 %vm3450_vm2, %v2993_v38  ;;  %v2999_v43 = vpack.c.bf16 %v478_v40, %v477_v42  ;;  %v3009_v54 = vpack.c.bf16 %v587_v49, %v586_v53  ;;  %v2692_v63 = vpop.f32.mrb[8].mxu0  ;;  %v3037_v49 = vpack.c.bf16 %v873_v48, %v872_v47  ;;  %v3041_v53 = vpack.c.bf16 %v875_v51, %v874_v50 }
 0x26f   :  { %v565_v3 = vpop.f32.mrb[9].mxu0  ;;  %v589_v5 = vmul.f32 %v2692_v63, %v3466_v29  ;;  %v1021_v33 = vsel %vm37_vm0, %v1017_v31, 0.0 }
 0x270   :  { %3010 = vmatprep.subr.bf16.mxu0 %v3009_v54  ;;  %v588_v6 = vmul.f32 %v565_v3, %v3473_v30 }
 0x271   :  { %3012 = vmatpush3.bf16.msra.mxu0 %v3009_v54  ;;  %v1132_v54 = vld [vmem:[%s3907_s2 + $0xa0] sm:$0xff] }
 0x272   :  { %v3013_v7 = vpack.c.bf16 %v589_v5, %v588_v6  ;;  %v2695_v9 = vpop.f32.mrb[10].mxu0 }
 0x273   :  { %v591_v14 = vmul.f32 %v2695_v9, %v3482_v36  ;;  %v575_v17 = vpop.f32.mrb[11].mxu0 }
 0x274   :  { %v590_v18 = vmul.f32 %v575_v17, %v3487_v37  ;;  %3014 = vmatprep.subr.bf16.mxu0 %v3013_v7 }
 0x275   :  { %2998 = vmatpush3.bf16.xpose.msk.msra.mxu1 %vm3450_vm2, %v2993_v38  ;;  %3016 = vmatpush3.bf16.msra.mxu0 %v3013_v7 }
 0x276   :  { %3001 = vmatprep.subr.msk.bf16.mxu1 %vm3450_vm2, %v2999_v43  ;;  %v3017_v19 = vpack.c.bf16 %v591_v14, %v590_v18 }
 0x278   :  { %3018 = vmatprep.subr.bf16.mxu0 %v3017_v19 }
 0x279   :  { %3020 = vmatpush3.bf16.msra.mxu0 %v3017_v19 }
 0x27a   :  { %3022 = vmatprep.subr.bf16.mxu0 %v3527_v20 }
 0x27d   :  { %3004 = vmatpush3.bf16.xpose.msk.msra.mxu1 %vm3450_vm2, %v2999_v43  ;;  %v3552_v43 = vpack.c.bf16 %v3446_v21, %v3457_v23 }
 0x27e   :  { %3038 = vmatprep.subr.bf16.mxu1 %v3037_v49 }
 0x284   :  { %2713 = vmatmul.mubr.msk.f32.vlgmr.msra.gmra.mrb[10].mxu1 %vm37_vm0, %v3362_v57 }
 0x285   :  { %3040 = vmatpush3.bf16.msra.mxu1 %v3037_v49 }
 0x286   :  { %3042 = vmatprep.subr.bf16.mxu1 %v3041_v53 }
 0x289   :  { %3044 = vmatpush3.bf16.msra.mxu1 %v3041_v53 }
 0x357   :  { %v2714_v57 = vpop.f32.mrb[10].mxu1 }
 0x358   :  { %v698_v58 = vsub.f32 %v2714_v57, %v3510_v55  ;;  %v688_v59 = vpop.f32.mrb[11].mxu1  ;;  %v1133_v57 = vld [vmem:[%s3907_s2 + $0xa8] sm:$0xff] }
 0x359   :  { %v697_v60 = vsub.f32 %v688_v59, %v3515_v56 }
 0x35a   :  { %v703_v61 = vsel %vm699_vm3, %v698_v58, -inf }
 0x35b   :  { %704 = vmax.xlane.f32.xlu1 %v703_v61  ;;  %v700_v62 = vsel %vm699_vm3, %v697_v60, -inf }
 0x35c   :  { %701 = vmax.xlane.f32.xlu0 %v700_v62 }
 0x35f   :  { %1012 = vadd.xlane.f32.xlu1 %v1011_v27 }
 0x360   :  { %1009 = vadd.xlane.f32.xlu0 %v1008_v26 }
 0x363   :  { %1022 = vadd.xlane.f32.xlu1 %v1021_v33 }
 0x364   :  { %1019 = vadd.xlane.f32.xlu0 %v1018_v32 }
 0x3e8   :  { %v705_v34 = vpop.xlane.xlu1 %704 }
 0x3e9   :  { %v707_v35 = vsub.f32 %v698_v58, %v705_v34  ;;  %v702_v38 = vpop.xlane.xlu0 %701  ;;  %v3053_v58 = vpack.c.bf16 %v1133_v57, %v1132_v54  ;;  %v2393_v57 = vld [vmem:[%s3907_s2 + $0x233] ss:$0 sm:$0xff] }
 0x3ea   :  { %v706_v39 = vsub.f32 %v697_v60, %v702_v38 }
 0x3eb   :  { %v710_v40 = vmul.f32 1.442695, %v707_v35  ;;  %3054 = vmatprep.subr.bf16.mxu1 %v3053_v58  ;;  %v3595_v35 = vld [vmem:[%s3907_s2 + $0x23d] ss:$0 sm:$0xff] }
 0x3ec   :  { %v708_v41 = vmul.f32 1.442695, %v706_v39  ;;  %v1013_v62 = vpop.xlane.xlu1 %1012 }
 0x3ed   :  { %v1010_v59 = vpop.xlane.xlu0 %1009  ;;  %v1015_v5 = vmul.f32 0.03125, %v1013_v62 }
 0x3ee   :  { %3190 = vpow2.f32 %v708_v41  ;;  %v1014_v60 = vmul.f32 0.03125, %v1010_v59  ;;  %v3602_v41 = vld [vmem:[%s3907_s2 + $0x23e] ss:$0 sm:$0xff] }
 0x3ef   :  { %3192 = vpow2.f32 %v710_v40  ;;  %v1027_v17 = vmul.f32 %v1015_v5, %v1015_v5  ;;  %v1031_v38 = vsub.f32 %v3538_v25, %v1015_v5 }
 0x3f0   :  { %v1026_v63 = vmul.f32 %v1014_v60, %v1014_v60  ;;  %v1023_v9 = vpop.xlane.xlu1 %1022  ;;  %v1030_v32 = vsub.f32 %v3533_v24, %v1014_v60  ;;  %v1134_v24 = vld [vmem:[%s3907_s2 + $0xb0] sm:$0xff] }
 0x3f1   :  { %v1020_v61 = vpop.xlane.xlu0 %1019  ;;  %v1025_v18 = vmul.f32 0.03125, %v1023_v9 }
 0x3f2   :  { %v1024_v3 = vmul.f32 0.03125, %v1020_v61 }
 0x3f3   :  { %v1029_v26 = vsub.f32 %v1025_v18, %v1027_v17 }
 0x3f4   :  { %v1028_v7 = vsub.f32 %v1024_v3, %v1026_v63 }
 0x3f5   :  { %v1033_v27 = vadd.f32 1e-06, %v1029_v26 }
 0x3f6   :  { %v1032_v19 = vadd.f32 1e-06, %v1028_v7 }
 0x3f8   :  { %v3191_v42 = vpop.eup %3190  ;;  %3194 = vrsqrt.f32 %v1032_v19 }
 0x3f9   :  { %v3193_v44 = vpop.eup %3192  ;;  %2731 = vmatprep.mubr.msk.f32.mxu0 %vm699_vm3, %v3191_v42  ;;  %3196 = vrsqrt.f32 %v1033_v27  ;;  %v1042_v27 = vld [vmem:[%s3907_s2 + $0x80] sm:$0xff] }
 0x3fa   :  { %2732 = vmatmul.mubr.msk.f32.vlgmr.msra.gmra.mrb[12].mxu0 %vm699_vm3, %v3193_v44 }
 0x3fb   :  { %3024 = vmatpush3.bf16.msra.mxu0 %v3527_v20  ;;  %2750 = vmatprep.mubr.msk.f32.mxu0 %vm699_vm3, %v3191_v42 }
 0x3fc   :  { %3026 = vmatprep.subr.bf16.mxu0 %v3552_v43 }
 0x3ff   :  { %3028 = vmatpush3.bf16.msra.mxu0 %v3552_v43 }
 0x400   :  { %3030 = vmatprep.subr.bf16.mxu0 %v3561_v45 }
 0x402   :  { %v3195_v33 = vpop.eup %3194 }
 0x403   :  { %3032 = vmatpush3.bf16.msra.mxu0 %v3561_v45  ;;  %v1036_v34 = vmul.f32 %v3195_v33, %v1030_v32  ;;  %v3197_v39 = vpop.eup %3196  ;;  %v1044_v32 = vld [vmem:[%s3907_s2 + $0x90] sm:$0xff]  ;;  %v1045_v33 = vld [vmem:[%s3907_s2 + $0x98] sm:$0xff] }
 0x404   :  { %3034 = vmatprep.subr.bf16.mxu0 %v3567_v46  ;;  %v1037_v25 = vmul.f32 %v3197_v39, %v1031_v38  ;;  %v1222_v38 = vld [vmem:[%s3907_s2 + $0xc0] sm:$0xff]  ;;  %v1223_v39 = vld [vmem:[%s3907_s2 + $0xc8] sm:$0xff] }
 0x405   :  { %v1038_v40 = vmul.f32 %v3595_v35, %v1036_v34  ;;  %v3049_v34 = vpack.c.bf16 %v1045_v33, %v1044_v32 }
 0x406   :  { %v1039_v53 = vmul.f32 %v3595_v35, %v1037_v25 }
 0x407   :  { %3036 = vmatpush3.bf16.msra.mxu0 %v3567_v46  ;;  %v3611_v50 = vadd.f32 %v3602_v41, %v1038_v40  ;;  %v3061_v40 = vpack.c.bf16 %v1223_v39, %v1222_v38 }
 0x408   :  { %v3619_v54 = vadd.f32 %v3602_v41, %v1039_v53 }
 0x40a   :  { %2751 = vmatmul.mubr.msk.f32.vlgmr.msra.gmra.mrb[14].mxu0 %vm699_vm3, %v3193_v44  ;;  %v1135_v44 = vld [vmem:[%s3907_s2 + $0xb8] sm:$0xff] }
 0x40b   :  { %v3057_v51 = vpack.c.bf16 %v1135_v44, %v1134_v24 }
 0x4cd   :  { %v2733_v6 = vpop.f32.mrb[12].mxu0 }
 0x4ce   :  { %v784_v14 = vpop.f32.mrb[13].mxu0 }
 0x4dd   :  { %v2752_v28 = vpop.f32.mrb[14].mxu0 }
 0x4de   :  { %3198 = vrcp.f32 %v2752_v28  ;;  %v859_v31 = vpop.f32.mrb[15].mxu0  ;;  %v1043_v28 = vld [vmem:[%s3907_s2 + $0x88] sm:$0xff] }
 0x4df   :  { %3200 = vrcp.f32 %v859_v31  ;;  %v3045_v31 = vpack.c.bf16 %v1043_v28, %v1042_v27 }
 0x4e1   :  { %3046 = vmatprep.subr.bf16.mxu0 %v3045_v31 }
 0x4e2   :  { %3048 = vmatpush3.bf16.msra.mxu0 %v3045_v31 }
 0x4e3   :  { %3050 = vmatprep.subr.bf16.mxu0 %v3049_v34 }
 0x4e6   :  { %3052 = vmatpush3.bf16.msra.mxu0 %v3049_v34 }
 0x4e7   :  { %3062 = vmatprep.subr.bf16.mxu0 %v3061_v40 }
 0x4e8   :  { %v3199_v42 = vpop.eup %3198 }
 0x4e9   :  { %v3201_v47 = vpop.eup %3200  ;;  %v871_v48 = vmul.f32 %v3199_v42, %v2733_v6 }
 0x4ea   :  { %v870_v49 = vmul.f32 %v3201_v47, %v784_v14 }
 0x4ec   :  { %2761 = vmatprep.mubr.msk.f32.mxu1 %vm37_vm0, %v870_v49 }
 0x4ed   :  { %2762 = vmatmul.mubr.msk.f32.vlgmr.msra.gmra.mrb[12].mxu1 %vm37_vm0, %v871_v48 }
 0x4ee   :  { %3056 = vmatpush3.bf16.msra.mxu1 %v3053_v58  ;;  %2783 = vmatprep.mubr.msk.f32.mxu1 %vm37_vm0, %v3611_v50 }
 0x4ef   :  { %3058 = vmatprep.subr.bf16.mxu1 %v3057_v51 }
 0x4f2   :  { %3060 = vmatpush3.bf16.msra.mxu1 %v3057_v51 }
 0x4f5   :  { %2784 = vmatmul.mubr.msk.f32.vlgmr.msra.gmra.mrb[14].mxu1 %vm37_vm0, %v3619_v54 }
 0x4f6   :  { %2801 = vmatprep.mubr.msk.f32.mxu1 %vm341_vm1, %v3350_v52 }
 0x5c0   :  { %v2763_v59 = vpop.f32.mrb[12].mxu1 }
 0x5c1   :  { %v959_v58 = vadd.f32 %v2763_v59, %v2393_v57  ;;  %v953_v60 = vpop.f32.mrb[13].mxu1 }
 0x5c2   :  { %v954_v61 = vadd.f32 %v2393_v57, %v953_v60 }
 0x5c3   :  { %v3629_v62 = vadd.f32 %v959_v58, %v3285_v1  ;;  %v2401_v1 = vld [vmem:[%s3907_s2 + $0x235] ss:$0 sm:$0xff] }
 0x5c4   :  { %v3632_v63 = vadd.f32 %v954_v61, %v3280_v0 }
 0x5c5   :  { %v967_v3 = vsel %vm37_vm0, %v3629_v62, 0.0  ;;  %v973_v5 = vmul.f32 %v3629_v62, %v3629_v62 }
 0x5c6   :  { %968 = vadd.xlane.f32.xlu1 %v967_v3  ;;  %v964_v6 = vsel %vm37_vm0, %v3632_v63, 0.0  ;;  %v972_v7 = vmul.f32 %v3632_v63, %v3632_v63 }
 0x5c7   :  { %965 = vadd.xlane.f32.xlu0 %v964_v6  ;;  %v977_v9 = vsel %vm37_vm0, %v973_v5, 0.0 }
 0x5c8   :  { %v2785_v0 = vpop.f32.mrb[14].mxu1  ;;  %v974_v18 = vsel %vm37_vm0, %v972_v7, 0.0 }
 0x5c9   :  { %v1219_v14 = vadd.f32 %v2785_v0, %v2401_v1  ;;  %v1213_v17 = vpop.f32.mrb[15].mxu1 }
 0x5ca   :  { %978 = vadd.xlane.f32.xlu1 %v977_v9  ;;  %v1214_v19 = vadd.f32 %v2401_v1, %v1213_v17  ;;  %v1224_v17 = vld [vmem:[%s3907_s2 + $0xd0] sm:$0xff] }
 0x5cb   :  { %975 = vadd.xlane.f32.xlu0 %v974_v18  ;;  %v1225_v18 = vld [vmem:[%s3907_s2 + $0xd8] sm:$0xff] }
 0x5cc   :  { %v3069_v26 = vpack.c.bf16 %v1219_v14, %v1214_v19  ;;  %v3065_v27 = vpack.c.bf16 %v1225_v18, %v1224_v17 }
 0x5ce   :  { %3070 = vmatprep.subr.bf16.mxu1 %v3069_v26 }
 0x5cf   :  { %3072 = vmatpush3.bf16.msra.mxu1 %v3069_v26 }
 0x5d2   :  { %2802 = vmatmul.mubr.msk.f32.vlgmr.msra.gmra.mrb[16].mxu1 %vm341_vm1, %v3370_v2 }
 0x5d3   :  { %2804 = vmatprep.mubr.msk.f32.mxu1 %vm341_vm1, %v3375_v4 }
 0x5d6   :  { %2805 = vmatmul.mubr.msk.f32.gmra.mrb[18].mxu1 %vm341_vm1, %v3384_v8 }
 0x5d7   :  { %2807 = vmatprep.mubr.msk.f32.mxu1 %vm341_vm1, %v3389_v10 }
 0x5da   :  { %2808 = vmatmul.mubr.msk.f32.gmra.mrb[20].mxu1 %vm341_vm1, %v3398_v11 }
 0x5db   :  { %2810 = vmatprep.mubr.msk.f32.mxu1 %vm341_vm1, %v3403_v12 }
 0x5de   :  { %2811 = vmatmul.mubr.msk.f32.gmra.mrb[22].mxu1 %vm341_vm1, %v3414_v13 }
 0x653   :  { %v969_v42 = vpop.xlane.xlu1 %968 }
 0x654   :  { %v971_v24 = vmul.f32 0.03125, %v969_v42  ;;  %v966_v44 = vpop.xlane.xlu0 %965 }
 0x655   :  { %v970_v47 = vmul.f32 0.03125, %v966_v44 }
 0x656   :  { %v983_v25 = vmul.f32 %v971_v24, %v971_v24  ;;  %v987_v3 = vsub.f32 %v3629_v62, %v971_v24 }
 0x657   :  { %v979_v48 = vpop.xlane.xlu1 %978  ;;  %v982_v53 = vmul.f32 %v970_v47, %v970_v47  ;;  %v986_v6 = vsub.f32 %v3632_v63, %v970_v47 }
 0x658   :  { %v981_v49 = vmul.f32 0.03125, %v979_v48  ;;  %v976_v51 = vpop.xlane.xlu0 %975 }
 0x659   :  { %v980_v57 = vmul.f32 0.03125, %v976_v51  ;;  %v2398_v51 = vld [vmem:[%s3907_s2 + $0x234] ss:$0 sm:$0xff] }
 0x65a   :  { %v985_v59 = vsub.f32 %v981_v49, %v983_v25 }
 0x65b   :  { %v984_v58 = vsub.f32 %v980_v57, %v982_v53 }
 0x65c   :  { %v989_v60 = vadd.f32 1e-06, %v985_v59 }
 0x65d   :  { %v988_v61 = vadd.f32 1e-06, %v984_v58 }
 0x65e   :  { %3202 = vrsqrt.f32 %v989_v60  ;;  %v2404_v60 = vld [vmem:[%s3907_s2 + $0x236] ss:$0 sm:$0xff] }
 0x65f   :  { %3204 = vrsqrt.f32 %v988_v61 }
 0x668   :  { %v3203_v5 = vpop.eup %3202 }
 0x669   :  { %v3205_v7 = vpop.eup %3204  ;;  %v993_v1 = vmul.f32 %v3203_v5, %v987_v3 }
 0x66a   :  { %v992_v0 = vmul.f32 %v3205_v7, %v986_v6 }
 0x66b   :  { %v1000_v9 = vmul.f32 %v3595_v35, %v993_v1 }
 0x66c   :  { %v999_v14 = vmul.f32 %v3595_v35, %v992_v0 }
 0x66d   :  { %v1007_v26 = vadd.f32 %v3602_v41, %v1000_v9 }
 0x66e   :  { %v1006_v19 = vadd.f32 %v3602_v41, %v999_v14 }
 0x670   :  { %2772 = vmatprep.mubr.msk.f32.mxu0 %vm37_vm0, %v1006_v19 }
 0x671   :  { %2773 = vmatmul.mubr.msk.f32.vlgmr.msra.gmra.mrb[16].mxu0 %vm37_vm0, %v1007_v26 }
 0x672   :  { %3064 = vmatpush3.bf16.msra.mxu0 %v3061_v40  ;;  %2794 = vmatprep.mubr.msk.f32.mxu0 %vm37_vm0, %v3611_v50 }
 0x673   :  { %3066 = vmatprep.subr.bf16.mxu0 %v3065_v27 }
 0x676   :  { %3068 = vmatpush3.bf16.msra.mxu0 %v3065_v27 }
 0x679   :  { %2795 = vmatmul.mubr.msk.f32.vlgmr.msra.gmra.mrb[18].mxu0 %vm37_vm0, %v3619_v54 }
 0x67a   :  { %2817 = vmatprep.mubr.msk.f32.mxu0 %vm341_vm1, %v3350_v52 }
 0x6a5   :  { %v2803_v35 = vpop.f32.mrb[16].mxu1 }
 0x6a6   :  { %v1412_v41 = vmul.f32 %v2803_v35, %v3434_v15  ;;  %v1372_v28 = vpop.f32.mrb[17].mxu1 }
 0x6a7   :  { %v1411_v31 = vmul.f32 %v1372_v28, %v3439_v16 }
 0x6a9   :  { %v3077_v32 = vpack.c.bf16 %v1412_v41, %v1411_v31  ;;  %v2806_v33 = vpop.f32.mrb[18].mxu1 }
 0x6aa   :  { %v1414_v34 = vmul.f32 %v2806_v33, %v3446_v21  ;;  %v1382_v38 = vpop.f32.mrb[19].mxu1 }
 0x6ab   :  { %3079 = vmatprep.subr.msk.bf16.mxu1 %vm3450_vm2, %v3077_v32  ;;  %v1413_v50 = vmul.f32 %v1382_v38, %v3457_v23 }
 0x6ac   :  { %3082 = vmatpush3.bf16.xpose.msk.msra.mxu1 %vm3450_vm2, %v3077_v32 }
 0x6ad   :  { %v3083_v52 = vpack.c.bf16 %v1414_v34, %v1413_v50  ;;  %v2809_v54 = vpop.f32.mrb[20].mxu1  ;;  %v1906_v50 = vld [vmem:[%s3907_s2 + $0x128] sm:$0xff] }
 0x6ae   :  { %v1416_v39 = vmul.f32 %v2809_v54, %v3466_v29  ;;  %v1392_v40 = vpop.f32.mrb[21].mxu1 }
 0x6af   :  { %3085 = vmatprep.subr.msk.bf16.mxu1 %vm3450_vm2, %v3083_v52  ;;  %v1415_v42 = vmul.f32 %v1392_v40, %v3473_v30  ;;  %v1813_v40 = vld [vmem:[%s3907_s2 + $0xf0] sm:$0xff] }
 0x6b1   :  { %v3089_v24 = vpack.c.bf16 %v1416_v39, %v1415_v42  ;;  %v2812_v44 = vpop.f32.mrb[22].mxu1  ;;  %v1814_v42 = vld [vmem:[%s3907_s2 + $0xf8] sm:$0xff] }
 0x6b2   :  { %v1418_v47 = vmul.f32 %v2812_v44, %v3482_v36  ;;  %v1402_v48 = vpop.f32.mrb[23].mxu1  ;;  %v1901_v44 = vld [vmem:[%s3907_s2 + $0x100] sm:$0xff] }
 0x6b3   :  { %v1417_v25 = vmul.f32 %v1402_v48, %v3487_v37 }
 0x6b4   :  { %3088 = vmatpush3.bf16.xpose.msk.msra.mxu1 %vm3450_vm2, %v3083_v52  ;;  %v1907_v52 = vld [vmem:[%s3907_s2 + $0x130] sm:$0xff] }
 0x6b5   :  { %3091 = vmatprep.subr.msk.bf16.mxu1 %vm3450_vm2, %v3089_v24  ;;  %v3095_v49 = vpack.c.bf16 %v1418_v47, %v1417_v25  ;;  %v1902_v47 = vld [vmem:[%s3907_s2 + $0x108] sm:$0xff] }
 0x6b6   :  { %v3149_v48 = vpack.c.bf16 %v1902_v47, %v1901_v44  ;;  %v2447_v47 = vld [vmem:[%s3907_s2 + $0x23f] ss:$0 sm:$0xff] }
 0x6bc   :  { %3094 = vmatpush3.bf16.xpose.msk.msra.mxu1 %vm3450_vm2, %v3089_v24  ;;  %v3137_v24 = vpack.c.bf16 %v1814_v42, %v1813_v40 }
 0x6bd   :  { %3097 = vmatprep.subr.msk.bf16.mxu1 %vm3450_vm2, %v3095_v49 }
 0x6c4   :  { %3100 = vmatpush3.bf16.xpose.msk.msra.mxu1 %vm3450_vm2, %v3095_v49 }
 0x744   :  { %v2774_v53 = vpop.f32.mrb[16].mxu0 }
 0x745   :  { %v1123_v57 = vpop.f32.mrb[17].mxu0  ;;  %v1129_v58 = vadd.f32 %v2774_v53, %v2398_v51 }
 0x746   :  { %v1124_v59 = vadd.f32 %v2398_v51, %v1123_v57 }
 0x748   :  { %2845 = vmatprep.mubr.msk.f32.mxu1 %vm37_vm0, %v1124_v59 }
 0x749   :  { %2846 = vmatmul.mubr.msk.f32.vlgmr.msra.gmra.mrb[24].mxu1 %vm37_vm0, %v1129_v58 }
 0x74c   :  { %v2796_v61 = vpop.f32.mrb[18].mxu0 }
 0x74d   :  { %v1303_v3 = vadd.f32 %v2796_v61, %v2404_v60  ;;  %v1297_v22 = vpop.f32.mrb[19].mxu0  ;;  %v1903_v61 = vld [vmem:[%s3907_s2 + $0x110] sm:$0xff] }
 0x74e   :  { %v1298_v5 = vadd.f32 %v2404_v60, %v1297_v22 }
 0x750   :  { %v3073_v6 = vpack.c.bf16 %v1303_v3, %v1298_v5  ;;  %v1904_v3 = vld [vmem:[%s3907_s2 + $0x118] sm:$0xff]  ;;  %v2437_v5 = vld [vmem:[%s3907_s2 + $0x237] ss:$0 sm:$0xff] }
 0x751   :  { %v3153_v22 = vpack.c.bf16 %v1904_v3, %v1903_v61  ;;  %v2239_v61 = vld [vmem:[%s3907_s2 + $0x168] sm:$0xff] }
 0x752   :  { %3074 = vmatprep.subr.bf16.mxu0 %v3073_v6 }
 0x753   :  { %3076 = vmatpush3.bf16.msra.mxu0 %v3073_v6 }
 0x756   :  { %2818 = vmatmul.mubr.msk.f32.vlgmr.msra.gmra.mrb[20].mxu0 %vm341_vm1, %v3370_v2 }
 0x757   :  { %2820 = vmatprep.mubr.msk.f32.mxu0 %vm341_vm1, %v3375_v4 }
 0x75a   :  { %2821 = vmatmul.mubr.msk.f32.gmra.mrb[22].mxu0 %vm341_vm1, %v3384_v8 }
 0x75b   :  { %2823 = vmatprep.mubr.msk.f32.mxu0 %vm341_vm1, %v3389_v10 }
 0x75e   :  { %2824 = vmatmul.mubr.msk.f32.gmra.mrb[24].mxu0 %vm341_vm1, %v3398_v11 }
 0x75f   :  { %2826 = vmatprep.mubr.msk.f32.mxu0 %vm341_vm1, %v3403_v12 }
 0x762   :  { %2827 = vmatmul.mubr.msk.f32.gmra.mrb[26].mxu0 %vm341_vm1, %v3414_v13 }
 0x81c   :  { %v2847_v7 = vpop.f32.mrb[24].mxu1 }
 0x81d   :  { %v1638_v2 = vsub.f32 %v2847_v7, %v3510_v55  ;;  %v1628_v1 = vpop.f32.mrb[25].mxu1 }
 0x81e   :  { %v1637_v4 = vsub.f32 %v1628_v1, %v3515_v56 }
 0x81f   :  { %v1642_v8 = vsel %vm699_vm3, %v1638_v2, -inf }
 0x820   :  { %1643 = vmax.xlane.f32.xlu1 %v1642_v8  ;;  %v1639_v10 = vsel %vm699_vm3, %v1637_v4, -inf }
 0x821   :  { %1640 = vmax.xlane.f32.xlu0 %v1639_v10 }
 0x829   :  { %v2819_v0 = vpop.f32.mrb[20].mxu0 }
 0x82a   :  { %v1525_v11 = vmul.f32 %v2819_v0, %v3434_v15  ;;  %v1485_v9 = vpop.f32.mrb[21].mxu0 }
 0x82b   :  { %v1524_v12 = vmul.f32 %v1485_v9, %v3439_v16 }
 0x82d   :  { %v3101_v14 = vpack.c.bf16 %v1525_v11, %v1524_v12  ;;  %v2822_v13 = vpop.f32.mrb[22].mxu0 }
 0x82e   :  { %v1527_v17 = vmul.f32 %v2822_v13, %v3446_v21  ;;  %v1495_v55 = vpop.f32.mrb[23].mxu0 }
 0x82f   :  { %v1526_v18 = vmul.f32 %v1495_v55, %v3457_v23  ;;  %3102 = vmatprep.subr.bf16.mxu0 %v3101_v14 }
 0x830   :  { %3104 = vmatpush3.bf16.msra.mxu0 %v3101_v14 }
 0x831   :  { %v3105_v56 = vpack.c.bf16 %v1527_v17, %v1526_v18  ;;  %v2825_v19 = vpop.f32.mrb[24].mxu0 }
 0x832   :  { %v1529_v26 = vmul.f32 %v2825_v19, %v3466_v29  ;;  %v1505_v27 = vpop.f32.mrb[25].mxu0 }
 0x833   :  { %v1528_v35 = vmul.f32 %v1505_v27, %v3473_v30  ;;  %3106 = vmatprep.subr.bf16.mxu0 %v3105_v56 }
 0x834   :  { %3108 = vmatpush3.bf16.msra.mxu0 %v3105_v56 }
 0x835   :  { %v3109_v15 = vpack.c.bf16 %v1529_v26, %v1528_v35  ;;  %v2828_v16 = vpop.f32.mrb[26].mxu0 }
 0x836   :  { %v1531_v41 = vmul.f32 %v2828_v16, %v3482_v36  ;;  %v1515_v28 = vpop.f32.mrb[27].mxu0 }
 0x837   :  { %v1530_v21 = vmul.f32 %v1515_v28, %v3487_v37  ;;  %3110 = vmatprep.subr.bf16.mxu0 %v3109_v15  ;;  %v1905_v37 = vld [vmem:[%s3907_s2 + $0x120] sm:$0xff] }
 0x838   :  { %3112 = vmatpush3.bf16.msra.mxu0 %v3109_v15 }
 0x839   :  { %v3113_v23 = vpack.c.bf16 %v1531_v41, %v1530_v21  ;;  %v2138_v21 = vld [vmem:[%s3907_s2 + $0x140] sm:$0xff] }
 0x83b   :  { %3114 = vmatprep.subr.bf16.mxu0 %v3113_v23 }
 0x83c   :  { %3116 = vmatpush3.bf16.msra.mxu0 %v3113_v23  ;;  %v2139_v23 = vld [vmem:[%s3907_s2 + $0x148] sm:$0xff] }
 0x83d   :  { %3118 = vmatprep.subr.bf16.mxu0 %v3527_v20 }
 0x8ad   :  { %v1644_v29 = vpop.xlane.xlu1 %1643 }
 0x8ae   :  { %v1646_v31 = vsub.f32 %v1638_v2, %v1644_v29  ;;  %v1641_v32 = vpop.xlane.xlu0 %1640  ;;  %v2140_v29 = vld [vmem:[%s3907_s2 + $0x150] sm:$0xff] }
 0x8af   :  { %v1645_v30 = vsub.f32 %v1637_v4, %v1641_v32  ;;  %v2444_v4 = vld [vmem:[%s3907_s2 + $0x238] ss:$0 sm:$0xff] }
 0x8b0   :  { %v1649_v33 = vmul.f32 1.442695, %v1646_v31  ;;  %v3157_v31 = vpack.c.bf16 %v2139_v23, %v2138_v21  ;;  %v2141_v32 = vld [vmem:[%s3907_s2 + $0x158] sm:$0xff] }
 0x8b1   :  { %v1647_v34 = vmul.f32 1.442695, %v1645_v30  ;;  %v3161_v30 = vpack.c.bf16 %v2141_v32, %v2140_v29 }
 0x8b3   :  { %3206 = vpow2.f32 %v1647_v34 }
 0x8b4   :  { %3208 = vpow2.f32 %v1649_v33 }
 0x8bd   :  { %v3207_v38 = vpop.eup %3206 }
 0x8be   :  { %v3209_v36 = vpop.eup %3208  ;;  %2864 = vmatprep.mubr.msk.f32.mxu0 %vm699_vm3, %v3207_v38 }
 0x8bf   :  { %2865 = vmatmul.mubr.msk.f32.vlgmr.msra.gmra.mrb[28].mxu0 %vm699_vm3, %v3209_v36 }
 0x8c0   :  { %3120 = vmatpush3.bf16.msra.mxu0 %v3527_v20  ;;  %2883 = vmatprep.mubr.msk.f32.mxu0 %vm699_vm3, %v3207_v38  ;;  %v3141_v20 = vpack.c.bf16 %v1906_v50, %v1905_v37 }
 0x8c1   :  { %3122 = vmatprep.subr.bf16.mxu0 %v3552_v43 }
 0x8c4   :  { %3124 = vmatpush3.bf16.msra.mxu0 %v3552_v43  ;;  %v1908_v43 = vld [vmem:[%s3907_s2 + $0x138] sm:$0xff] }
 0x8c5   :  { %3126 = vmatprep.subr.bf16.mxu0 %v3561_v45  ;;  %v3145_v54 = vpack.c.bf16 %v1908_v43, %v1907_v52 }
 0x8c8   :  { %3128 = vmatpush3.bf16.msra.mxu0 %v3561_v45  ;;  %v1811_v45 = vld [vmem:[%s3907_s2 + $0xe0] sm:$0xff] }
 0x8c9   :  { %3130 = vmatprep.subr.bf16.mxu0 %v3567_v46 }
 0x8cc   :  { %3132 = vmatpush3.bf16.msra.mxu0 %v3567_v46  ;;  %v1812_v46 = vld [vmem:[%s3907_s2 + $0xe8] sm:$0xff] }
 0x8cd   :  { %3142 = vmatprep.subr.bf16.mxu0 %v3141_v20  ;;  %v3133_v39 = vpack.c.bf16 %v1812_v46, %v1811_v45 }
 0x8cf   :  { %2884 = vmatmul.mubr.msk.f32.vlgmr.msra.gmra.mrb[30].mxu0 %vm699_vm3, %v3209_v36  ;;  %3134 = vmatprep.subr.bf16.mxu1 %v3133_v39 }
 0x8d0   :  { %3144 = vmatpush3.bf16.msra.mxu0 %v3141_v20  ;;  %2905 = vmatprep.mubr.msk.f32.mxu0 %vm37_vm0, %v3632_v63 }
 0x8d1   :  { %3146 = vmatprep.subr.bf16.mxu0 %v3145_v54  ;;  %3136 = vmatpush3.bf16.msra.mxu1 %v3133_v39 }
 0x8d2   :  { %3138 = vmatprep.subr.bf16.mxu1 %v3137_v24 }
 0x8d4   :  { %3148 = vmatpush3.bf16.msra.mxu0 %v3145_v54 }
 0x8d5   :  { %3140 = vmatpush3.bf16.msra.mxu1 %v3137_v24  ;;  %3150 = vmatprep.subr.bf16.mxu0 %v3149_v48 }
 0x8d6   :  { %3158 = vmatprep.subr.bf16.mxu1 %v3157_v31 }
 0x8d7   :  { %2906 = vmatmul.mubr.msk.f32.vlgmr.msra.gmra.mrb[32].mxu0 %vm37_vm0, %v3629_v62 }
 0x8d8   :  { %3152 = vmatpush3.bf16.msra.mxu0 %v3149_v48 }
 0x8d9   :  { %3154 = vmatprep.subr.bf16.mxu0 %v3153_v22 }
 0x8dc   :  { %3156 = vmatpush3.bf16.msra.mxu0 %v3153_v22  ;;  %v2240_v22 = vld [vmem:[%s3907_s2 + $0x170] sm:$0xff] }
 0x992   :  { %v2866_v25 = vpop.f32.mrb[28].mxu0 }
 0x993   :  { %v1723_v49 = vpop.f32.mrb[29].mxu0 }
 0x9a2   :  { %v2885_v51 = vpop.f32.mrb[30].mxu0 }
 0x9a3   :  { %3210 = vrcp.f32 %v2885_v51  ;;  %v1798_v53 = vpop.f32.mrb[31].mxu0 }
 0x9a4   :  { %3212 = vrcp.f32 %v1798_v53  ;;  %v2448_v53 = vld [vmem:[%s3907_s2 + $0x240] ss:$0 sm:$0xff] }
 0x9ad   :  { %v3211_v57 = vpop.eup %3210 }
 0x9ae   :  { %v3213_v59 = vpop.eup %3212  ;;  %v1810_v58 = vmul.f32 %v3211_v57, %v2866_v25 }
 0x9af   :  { %v1809_v60 = vmul.f32 %v3213_v59, %v1723_v49 }
 0x9b1   :  { %2894 = vmatprep.mubr.msk.f32.mxu1 %vm37_vm0, %v1809_v60  ;;  %v2238_v60 = vld [vmem:[%s3907_s2 + $0x160] sm:$0xff] }
 0x9b2   :  { %2895 = vmatmul.mubr.msk.f32.vlgmr.msra.gmra.mrb[26].mxu1 %vm37_vm0, %v1810_v58  ;;  %v3165_v3 = vpack.c.bf16 %v2239_v61, %v2238_v60 }
 0x9b3   :  { %3160 = vmatpush3.bf16.msra.mxu1 %v3157_v31 }
 0x9b4   :  { %3162 = vmatprep.subr.bf16.mxu1 %v3161_v30 }
 0x9b7   :  { %3164 = vmatpush3.bf16.msra.mxu1 %v3161_v30 }
 0x9b8   :  { %3166 = vmatprep.subr.bf16.mxu1 %v3165_v3 }
 0xa85   :  { %v2896_v6 = vpop.f32.mrb[26].mxu1 }
 0xa86   :  { %v1892_v7 = vpop.f32.mrb[27].mxu1  ;;  %v1898_v1 = vadd.f32 %v2896_v6, %v2437_v5 }
 0xa87   :  { %v1893_v2 = vadd.f32 %v2437_v5, %v1892_v7  ;;  %v2241_v5 = vld [vmem:[%s3907_s2 + $0x178] sm:$0xff]  ;;  %v2242_v7 = vld [vmem:[%s3907_s2 + $0x180] sm:$0xff] }
 0xa88   :  { %v3169_v6 = vpack.c.bf16 %v2241_v5, %v2240_v22 }
 0xa89   :  { %2916 = vmatprep.mubr.msk.f32.mxu0 %vm37_vm0, %v1893_v2 }
 0xa8a   :  { %2917 = vmatmul.mubr.msk.f32.vlgmr.msra.gmra.mrb[32].mxu0 %vm37_vm0, %v1898_v1 }
 0xb5d   :  { %v2918_v8 = vpop.f32.mrb[32].mxu0 }
 0xb5e   :  { %v2077_v10 = vadd.f32 %v2918_v8, %v2444_v4  ;;  %v2062_v0 = vpop.f32.mrb[33].mxu0  ;;  %v2245_v8 = vld [vmem:[%s3907_s2 + $0x198] sm:$0xff] }
 0xb5f   :  { %v2076_v11 = vadd.f32 %v2444_v4, %v2062_v0  ;;  %v2244_v4 = vld [vmem:[%s3907_s2 + $0x190] sm:$0xff]  ;;  %v2449_v0 = vld [vmem:[%s3907_s2 + $0x239] ss:$0 sm:$0xff] }
 0xb60   :  { %v2446_v9 = vmul.f32 -1.442695, %v2077_v10  ;;  %v3177_v10 = vpack.c.bf16 %v2245_v8, %v2244_v4 }
 0xb61   :  { %v2445_v12 = vmul.f32 -1.442695, %v2076_v11 }
 0xb62   :  { %3214 = vpow2.f32 %v2446_v9 }
 0xb63   :  { %3216 = vpow2.f32 %v2445_v12 }
 0xb6c   :  { %v3215_v14 = vpop.eup %3214 }
 0xb6d   :  { %v3217_v13 = vpop.eup %3216  ;;  %v2085_v17 = vadd.f32 1.0, %v3215_v14 }
 0xb6e   :  { %v2084_v55 = vadd.f32 1.0, %v3217_v13 }
 0xb6f   :  { %3218 = vrcp.f32 %v2085_v17 }
 0xb70   :  { %3220 = vrcp.f32 %v2084_v55 }
 0xb79   :  { %v3219_v18 = vpop.eup %3218 }
 0xb7a   :  { %v3221_v56 = vpop.eup %3220  ;;  %v2091_v19 = vmul.f32 %v3219_v18, %v1898_v1 }
 0xb7b   :  { %v2090_v26 = vmul.f32 %v3221_v56, %v1893_v2  ;;  %v2243_v2 = vld [vmem:[%s3907_s2 + $0x188] sm:$0xff] }
 0xb7c   :  { %v3820_v27 = vadd.f32 %v2091_v19, %v3629_v62  ;;  %v3173_v1 = vpack.c.bf16 %v2243_v2, %v2242_v7 }
 0xb7d   :  { %v3823_v35 = vadd.f32 %v2090_v26, %v3632_v63 }
 0xb7e   :  { %v2097_v15 = vsel %vm37_vm0, %v3820_v27, 0.0  ;;  %v2103_v16 = vmul.f32 %v3820_v27, %v3820_v27 }
 0xb7f   :  { %2098 = vadd.xlane.f32.xlu1 %v2097_v15  ;;  %v2094_v41 = vsel %vm37_vm0, %v3823_v35, 0.0  ;;  %v2102_v28 = vmul.f32 %v3823_v35, %v3823_v35 }
 0xb80   :  { %2095 = vadd.xlane.f32.xlu0 %v2094_v41  ;;  %v2107_v62 = vsel %vm37_vm0, %v2103_v16, 0.0 }
 0xb81   :  { %v2104_v63 = vsel %vm37_vm0, %v2102_v28, 0.0  ;;  %v2452_v28 = vld [vmem:[%s3907_s2 + $0x23a] ss:$0 sm:$0xff] }
 0xb83   :  { %2108 = vadd.xlane.f32.xlu1 %v2107_v62 }
 0xb84   :  { %2105 = vadd.xlane.f32.xlu0 %v2104_v63 }
 0xc0c   :  { %v2099_v33 = vpop.xlane.xlu1 %2098 }
 0xc0d   :  { %v2101_v34 = vmul.f32 0.03125, %v2099_v33  ;;  %v2096_v38 = vpop.xlane.xlu0 %2095 }
 0xc0e   :  { %v2100_v36 = vmul.f32 0.03125, %v2096_v38 }
 0xc0f   :  { %v2113_v50 = vmul.f32 %v2101_v34, %v2101_v34  ;;  %v2117_v42 = vsub.f32 %v3820_v27, %v2101_v34 }
 0xc10   :  { %v2109_v37 = vpop.xlane.xlu1 %2108  ;;  %v2112_v43 = vmul.f32 %v2100_v36, %v2100_v36  ;;  %v2116_v44 = vsub.f32 %v3823_v35, %v2100_v36 }
 0xc11   :  { %v2111_v20 = vmul.f32 0.03125, %v2109_v37  ;;  %v2106_v52 = vpop.xlane.xlu0 %2105 }
 0xc12   :  { %v2110_v54 = vmul.f32 0.03125, %v2106_v52 }
 0xc13   :  { %v2115_v45 = vsub.f32 %v2111_v20, %v2113_v50 }
 0xc14   :  { %v2114_v46 = vsub.f32 %v2110_v54, %v2112_v43 }
 0xc15   :  { %v2119_v39 = vadd.f32 1e-06, %v2115_v45 }
 0xc16   :  { %v2118_v40 = vadd.f32 1e-06, %v2114_v46 }
 0xc17   :  { %3222 = vrsqrt.f32 %v2119_v39 }
 0xc18   :  { %3224 = vrsqrt.f32 %v2118_v40 }
 0xc21   :  { %v3223_v24 = vpop.eup %3222 }
 0xc22   :  { %v3225_v48 = vpop.eup %3224  ;;  %v2123_v25 = vmul.f32 %v3223_v24, %v2117_v42 }
 0xc23   :  { %v2122_v49 = vmul.f32 %v3225_v48, %v2116_v44 }
 0xc24   :  { %v2130_v51 = vmul.f32 %v2447_v47, %v2123_v25 }
 0xc25   :  { %v2129_v57 = vmul.f32 %v2447_v47, %v2122_v49 }
 0xc26   :  { %v2137_v58 = vadd.f32 %v2448_v53, %v2130_v51 }
 0xc27   :  { %v2136_v59 = vadd.f32 %v2448_v53, %v2129_v57 }
 0xc29   :  { %2927 = vmatprep.mubr.msk.f32.mxu1 %vm37_vm0, %v2136_v59 }
 0xc2a   :  { %2928 = vmatmul.mubr.msk.f32.vlgmr.msra.gmra.mrb[28].mxu1 %vm37_vm0, %v2137_v58 }
 0xc2b   :  { %3168 = vmatpush3.bf16.msra.mxu1 %v3165_v3 }
 0xc2c   :  { %3170 = vmatprep.subr.bf16.mxu1 %v3169_v6 }
 0xc2f   :  { %3172 = vmatpush3.bf16.msra.mxu1 %v3169_v6 }
 0xc30   :  { %3174 = vmatprep.subr.bf16.mxu1 %v3173_v1 }
 0xc33   :  { %3176 = vmatpush3.bf16.msra.mxu1 %v3173_v1 }
 0xc34   :  { %3178 = vmatprep.subr.bf16.mxu1 %v3177_v10 }
 0xc37   :  { %3180 = vmatpush3.bf16.msra.mxu1 %v3177_v10 }
 0xcfd   :  { %v2929_v11 = vpop.f32.mrb[28].mxu1 }
 0xcfe   :  { %v2225_v9 = vadd.f32 %v2929_v11, %v2449_v0  ;;  %v2219_v12 = vpop.f32.mrb[29].mxu1 }
 0xcff   :  { %v2220_v14 = vadd.f32 %v2449_v0, %v2219_v12 }
 0xd00   :  { %v2231_v13 = vmul.f32 0.70710677, %v2225_v9  ;;  %v2229_v15 = vmul.f32 0.5, %v2225_v9 }
 0xd01   :  { %v2230_v17 = vmul.f32 0.70710677, %v2220_v14  ;;  %v2228_v19 = vmul.f32 0.5, %v2220_v14 }
 0xd02   :  { %3226 = verf.f32 %v2231_v13 }
 0xd03   :  { %3228 = verf.f32 %v2230_v17 }
 0xd0c   :  { %v3227_v55 = vpop.eup %3226 }
 0xd0d   :  { %v3229_v18 = vpop.eup %3228  ;;  %v2235_v56 = vadd.f32 1.0, %v3227_v55 }
 0xd0e   :  { %v2234_v26 = vadd.f32 1.0, %v3229_v18 }
 0xd0f   :  { %v2237_v41 = vmul.f32 %v2235_v56, %v2229_v15 }
 0xd10   :  { %v2236_v16 = vmul.f32 %v2234_v26, %v2228_v19 }
 0xd12   :  { %2946 = vmatprep.mubr.msk.f32.mxu1 %vm699_vm3, %v2236_v16 }
 0xd13   :  { %2947 = vmatmul.mubr.msk.f32.vlgmr.msra.gmra.mrb[30].mxu1 %vm699_vm3, %v2237_v41 }
 0xde6   :  { %v2948_v62 = vpop.f32.mrb[30].mxu1 }
 0xde7   :  { %v2329_v63 = vadd.f32 %v2948_v62, %v2452_v28  ;;  %v2323_v21 = vpop.f32.mrb[31].mxu1 }
 0xde8   :  { %v2324_v23 = vadd.f32 %v2452_v28, %v2323_v21 }
 0xde9   :  { %v2333_v29 = vadd.f32 %v2329_v63, %v3820_v27 }
 0xdea   :  { %v2332_v31 = vadd.f32 %v2324_v23, %v3823_v35 }
 0xdeb   :  { %2335 = vst.msk [vmem:[#allocation2 + $0x8] sm:$0xff] %vm37_vm0, %v2333_v29 }
 0xdec   :  { %2334 = vst.msk [vmem:[#allocation2] sm:$0xff] %vm37_vm0, %v2332_v31 }
 0xded   :  { %3241 = shalt.err (!%p3238_p4)
}
 0xdee   :  { %s3242_s25 = scalar_lea.hbm %s3908_s3, 256 }
 0xdef   :  { %p3243_p5 = scmp.ne.s32.totalorder %s3908_s3, %s3242_s25  ;;  %p3246_p6 = scmp.lt.u32.totalorder %s3242_s25, %s3908_s3 }
 0xdf1   :  { %p3248_p7 = pnand %p3246_p6, %p3243_p5 }
 0xdf3   :  { %3251 = shalt.err (!%p3248_p7)
}
 0xdf4   :  { %s3255_s30 = smov 128   ;;  %s3256_s4 = smov 8  }
 0xdf5   :  { %2347 = dma.vmem_to_hbm [thread:$0]  %s2342_s22, 256, %s3908_s3, [#allocation3], %s3255_s30, %s3255_s30, %s3256_s4  }
 0xdf6   :  { %3252 = dma.done.wait [#allocation3], 256  }
 0xdf7   :  { %3253 = vsyncadd [#allocation3], 4294967040 }
 0xdf8   :  { %2351 = vsyncpa [#allocation3], 1 }

</bundles_post_ra>
